<compile_context>
chip_gen: v7x
topology: tpu7x:2x2x1
jax: 0.10.0
libtpu: 0.0.40
codegen_flags: <defaults>
</compile_context>

<pallas_src>
import functools

import jax
import jax.numpy as jnp
import numpy as np
from jax import lax
from jax.experimental import pallas as pl
from jax.experimental.pallas import tpu as pltpu

NEG_SLOPE = 0.01  # F.leaky_relu default


def _sigmoid(x):
    # exp lands on the EUP slot; saturates correctly for very negative x.
    return 1.0 / (1.0 + jnp.exp(-x))


# ----------------------------------------------------------------------------
# Fused kernel: embedding + leaky_relu + bmm + GRU decode + masking + sampling
# ----------------------------------------------------------------------------
def _matching_kernel(x12_ref, g_ref, w_emb_ref, b_emb_ref,
                     w_i_ref, w_h_ref, b_i_ref, b_hn_ref,
                     w_l_ref, b_l_ref,
                     logp_ref, idx_ref, sel_ref):
    n = w_l_ref.shape[1]          # n_nodes
    H = w_h_ref.shape[0]          # hidden_dim
    E = w_emb_ref.shape[1]        # embedding_dim
    Bt = idx_ref.shape[0]         # batch tile

    # ---- one embedding matmul + leaky_relu over [x1; x2] (batch folded into rows) ----
    e12 = jnp.dot(x12_ref[...], w_emb_ref[...],
                  preferred_element_type=jnp.float32) + b_emb_ref[...]      # (Bt*2n, E)
    e12 = jnp.where(e12 > 0, e12, NEG_SLOPE * e12)
    e12 = e12.reshape(Bt, 2 * n, E)
    e1 = e12[:, :n, :]                                                      # (Bt, n, E)
    e2 = e12[:, n:, :]                                                      # (Bt, n, E)

    # ---- batched bmm x1 @ x2^T: one lowered contraction, no Python-per-batch unroll ----
    xx = lax.dot_general(e1, e2, (((2,), (2,)), ((0,), (0,))),
                         preferred_element_type=jnp.float32)                # (Bt, n, n)

    # ---- hoist ALL input-gate projections (r|z|n) out of the decode loop ----
    xg_all = jnp.dot(xx.reshape(Bt * n, n), w_i_ref[...],
                     preferred_element_type=jnp.float32) + b_i_ref[...]     # (Bt*n, 3H)
    xg_all = xg_all.reshape(Bt, n, 3 * H)

    w_h = w_h_ref[...]            # (H, 3H) = [W_hr | W_hz | W_hn]
    b_hn = b_hn_ref[...]          # (1, H)
    w_l = w_l_ref[...]            # (H, n)
    b_l = b_l_ref[...]            # (1, n)
    g_all = g_ref[...]            # (Bt, n, n) Gumbel noise, loaded once

    h = jnp.zeros((Bt, H), jnp.float32)        # init_hx = zeros
    mask = jnp.zeros((Bt, n), jnp.float32)     # logit_mask = None -> zeros
    col = lax.broadcasted_iota(jnp.int32, (Bt, n), 1)   # hoisted out of the loop

    logp_rows, idx_cols, sel_cols = [], [], []

    # Statically unrolled decode loop (n_nodes is a compile-time constant).
    # TODO(synk): for large n_nodes switch to lax.fori_loop(..., unroll=True) with
    # (h, mask, accumulators) as carry to bound vreg live ranges.
    for i in range(n):
        xg = xg_all[:, i, :]                                                # (Bt, 3H)
        hg = jnp.dot(h, w_h, preferred_element_type=jnp.float32)            # (Bt, 3H)

        # PyTorch GRU cell, gate order (r, z, n); one sigmoid pass over the r|z slab.
        rz = _sigmoid(xg[:, :2 * H] + hg[:, :2 * H])
        r = rz[:, :H]
        z = rz[:, H:]
        ng = jnp.tanh(xg[:, 2 * H:] + r * (hg[:, 2 * H:] + b_hn))
        h = (1.0 - z) * ng + z * h

        # logits = 10 * tanh(to_logits(h)); previously selected entries -> -inf
        logits = 10.0 * jnp.tanh(
            jnp.dot(h, w_l, preferred_element_type=jnp.float32) + b_l)
        masked = jnp.where(mask > 0.0, -jnp.inf, logits)

        # LogSoftmax over the node axis
        m = jnp.max(masked, axis=-1, keepdims=True)
        lse = m + jnp.log(jnp.sum(jnp.exp(masked - m), axis=-1, keepdims=True))
        logp = masked - lse
        logp_rows.append(logp)

        # Gumbel-max sampling: argmax(logp + G) == multinomial(exp(logp)).
        score = logp + g_all[:, i, :]
        smax = jnp.max(score, axis=-1, keepdims=True)
        idx2 = jnp.min(jnp.where(score == smax, col, n), axis=-1, keepdims=True)  # (Bt, 1)
        sel_one = col == idx2
        idx_cols.append(idx2)
        sel_cols.append(jnp.sum(jnp.where(sel_one, logp, 0.0), axis=-1, keepdims=True))

        # Previously selected entries are -inf so they can never be resampled; the PyTorch
        # "[!] resampling due to race condition" branch is dead by construction.
        mask = jnp.maximum(mask, sel_one.astype(jnp.float32))

    # Single dense writeback per output ref (no per-step masked narrow stores).
    logp_ref[...] = jnp.stack(logp_rows, axis=1)                  # (Bt, n, n)
    idx_ref[...] = jnp.concatenate(idx_cols, axis=1)              # (Bt, n)
    sel_ref[...] = jnp.concatenate(sel_cols, axis=1)              # (Bt, n)


def matching_fused(x12, gumbel, w_emb_t, b_emb,
                   w_i_cat, w_h_cat, b_i_full, b_hn, w_l_t, b_l,
                   *, n_nodes, batch, batch_tile=None):
    n, B = n_nodes, batch
    if batch_tile is None:
        # Split into two batch tiles when possible so the "parallel" grid axis shards across
        # v7x's two TensorCores.  Tiles keep the second-to-last block dim a multiple of 8
        # (or the full extent).  VMEM per tile is tiny at these shapes; for large n/B derive
        # Bt from a VMEM budget and set vmem_limit_bytes explicitly (v7x has 64 MiB VMEM).
        half = B // 2
        Bt = half if (B % 2 == 0 and half % 8 == 0) else B
    else:
        Bt = batch_tile
    assert B % Bt == 0 and (Bt == B or Bt % 8 == 0)
    D = x12.shape[1]
    E = w_emb_t.shape[1]
    H = w_h_cat.shape[0]

    full2 = lambda b: (0, 0)

    return pl.pallas_call(
        _matching_kernel,
        out_shape=(jax.ShapeDtypeStruct((B, n, n), jnp.float32),  # per-step log-probs
                   jax.ShapeDtypeStruct((B, n), jnp.int32),       # selections
                   jax.ShapeDtypeStruct((B, n), jnp.float32)),    # selected log-probs
        grid=(B // Bt,),
        in_specs=[
            pl.BlockSpec((Bt * 2 * n, D), lambda b: (b, 0)),      # [x1; x2] rows
            pl.BlockSpec((Bt, n, n), lambda b: (b, 0, 0)),        # Gumbel noise
            pl.BlockSpec((D, E), full2),                          # W_emb^T
            pl.BlockSpec((1, E), full2),                          # b_emb
            pl.BlockSpec((n, 3 * H), full2),                      # [W_ir|W_iz|W_in]^T
            pl.BlockSpec((H, 3 * H), full2),                      # [W_hr|W_hz|W_hn]^T
            pl.BlockSpec((1, 3 * H), full2),                      # [b_ir+b_hr|b_iz+b_hz|b_in]
            pl.BlockSpec((1, H), full2),                          # b_hn
            pl.BlockSpec((H, n), full2),                          # W_logits^T
            pl.BlockSpec((1, n), full2),                          # b_logits
        ],
        out_specs=(
            pl.BlockSpec((Bt, n, n), lambda b: (b, 0, 0)),
            pl.BlockSpec((Bt, n), lambda b: (b, 0)),
            pl.BlockSpec((Bt, n), lambda b: (b, 0)),
        ),
        compiler_params=pltpu.CompilerParams(
            dimension_semantics=("parallel",)),   # batch tiles shard across v7x's 2 TCs
    )(x12, gumbel, w_emb_t, b_emb, w_i_cat, w_h_cat, b_i_full, b_hn, w_l_t, b_l)


# ----------------------------------------------------------------------------
# Full forward (thin JAX glue around the single fused kernel)
# ----------------------------------------------------------------------------
@functools.partial(jax.jit, static_argnames=("n_nodes",))
def matching_no_decoder_forward(x, params, key, *, n_nodes):
    B, D, _ = x.shape
    n = n_nodes
    H = params["w_hh"].shape[1]

    x1 = jnp.transpose(x[:, :, :n], (0, 2, 1)).astype(jnp.float32)          # (B, n, D)
    x2 = jnp.transpose(x[:, :, n:2 * n], (0, 2, 1)).astype(jnp.float32)     # (B, n, D)
    x12 = jnp.concatenate([x1, x2], axis=1).reshape(B * 2 * n, D)           # (B*2n, D)

    # Pre-transpose / pre-concatenate GRU weights once (PyTorch gate order r, z, n).
    w_i_cat = params["w_ih"].T           # (n, 3H)
    w_h_cat = params["w_hh"].T           # (H, 3H)
    b_ih, b_hh = params["b_ih"], params["b_hh"]
    b_i_full = jnp.concatenate([b_ih[:2 * H] + b_hh[:2 * H], b_ih[2 * H:]])[None, :]   # (1, 3H)
    b_hn = b_hh[2 * H:][None, :]                                                       # (1, H)

    # Host-generated Gumbel noise: argmax(logp + G) == multinomial(exp(logp)).
    gumbel = jax.random.gumbel(key, (B, n, n), jnp.float32)

    logp_bnn, idx_bn, sel_bn = matching_fused(
        x12, gumbel,
        params["w_emb"].T, params["b_emb"][None, :],
        w_i_cat, w_h_cat, b_i_full, b_hn,
        params["w_l"].T, params["b_l"][None, :],
        n_nodes=n, batch=B)

    stacked = jnp.transpose(logp_bnn, (1, 0, 2))                 # (n, B, n) == torch.stack(probs)

    # One vectorized gather of the chosen coordinates (replaces n separate gathers).
    acts = jnp.take_along_axis(x2, idx_bn[:, :, None], axis=1)   # (B, n, D)

    probs_ = [sel_bn[:, i] for i in range(n)]        # selected log-probs (PyTorch naming)
    actions = [acts[:, i, :] for i in range(n)]
    selections = [idx_bn[:, i] for i in range(n)]
    return probs_, actions, selections, stacked


# ----------------------------------------------------------------------------
# Deterministic parameter init (PyTorch-style uniform fan-in init)
# ----------------------------------------------------------------------------
def init_params(key, n_nodes, input_dim, embedding_dim, hidden_dim):
    ks = jax.random.split(key, 8)

    def uinit(k, shape, fan_in):
        bound = 1.0 / float(fan_in) ** 0.5
        return jax.random.uniform(k, shape, jnp.float32, -bound, bound)

    return {
        "w_emb": uinit(ks[0], (embedding_dim, input_dim), input_dim),
        "b_emb": uinit(ks[1], (embedding_dim,), input_dim),
        "w_ih": uinit(ks[2], (3 * hidden_dim, n_nodes), hidden_dim),
        "w_hh": uinit(ks[3], (3 * hidden_dim, hidden_dim), hidden_dim),
        "b_ih": uinit(ks[4], (3 * hidden_dim,), hidden_dim),
        "b_hh": uinit(ks[5], (3 * hidden_dim,), hidden_dim),
        "w_l": uinit(ks[6], (n_nodes, hidden_dim), hidden_dim),
        "b_l": uinit(ks[7], (n_nodes,), hidden_dim),
    }


if __name__ == "__main__":
    n_nodes, input_dim, embedding_dim, hidden_dim = 8, 4, 32, 32
    batch = 2

    root = jax.random.PRNGKey(0)
    k_params, k_x, k_sample = jax.random.split(root, 3)

    params = init_params(k_params, n_nodes, input_dim, embedding_dim, hidden_dim)
    x = jax.random.normal(k_x, (batch, input_dim, 2 * n_nodes), jnp.float32)

    probs_, actions, selections, stacked = matching_no_decoder_forward(
        x, params, k_sample, n_nodes=n_nodes)

    stacked = jax.block_until_ready(stacked)
    idxs = np.asarray(jax.block_until_ready(jnp.stack(selections)))      # (n, B)
    sel_logps = np.asarray(jax.block_until_ready(jnp.stack(probs_)))     # (n, B)
    acts = np.asarray(jax.block_until_ready(jnp.stack(actions)))         # (n, B, D)
    stacked_np = np.asarray(stacked)

    # shape checks
    assert stacked_np.shape == (n_nodes, batch, n_nodes)
    assert acts.shape == (n_nodes, batch, input_dim)
    assert idxs.shape == (n_nodes, batch)
    assert np.all(np.isfinite(sel_logps))

    x2_np = np.asarray(jnp.transpose(x[:, :, n_nodes:2 * n_nodes], (0, 2, 1)))
    for b in range(batch):
        # masking guarantees n distinct selections per batch element
        assert len(set(idxs[:, b].tolist())) == n_nodes
        for i in range(n_nodes):
            row = stacked_np[i, b]
            # valid log-prob distribution over the not-yet-selected indices
            assert abs(float(np.exp(row[np.isfinite(row)]).sum()) - 1.0) < 1e-3
            # previously selected indices are masked to -inf
            for j in range(i):
                assert row[idxs[j, b]] == -np.inf
            # selected log-prob returned by the kernel matches the stacked log-probs
            assert np.allclose(sel_logps[i, b], row[idxs[i, b]], atol=1e-5)
            # gathered action matches x2 at the selected index
            assert np.array_equal(acts[i, b], x2_np[b, idxs[i, b]])

    print("KERNEL_OK")
</pallas_src>

<mosaic_0001>
module attributes {stable_mosaic.version = 11 : i64} {
  func.func @_matching_kernel(%arg0: i32, %arg1: memref<32x4xf32, #tpu.memory_space<vmem>>, %arg2: memref<2x8x8xf32, #tpu.memory_space<vmem>>, %arg3: memref<4x32xf32, #tpu.memory_space<vmem>>, %arg4: memref<1x32xf32, #tpu.memory_space<vmem>>, %arg5: memref<8x96xf32, #tpu.memory_space<vmem>>, %arg6: memref<32x96xf32, #tpu.memory_space<vmem>>, %arg7: memref<1x96xf32, #tpu.memory_space<vmem>>, %arg8: memref<1x32xf32, #tpu.memory_space<vmem>>, %arg9: memref<32x8xf32, #tpu.memory_space<vmem>>, %arg10: memref<1x8xf32, #tpu.memory_space<vmem>>, %arg11: memref<2x8x8xf32, #tpu.memory_space<vmem>>, %arg12: memref<2x8xi32, #tpu.memory_space<vmem>>, %arg13: memref<2x8xf32, #tpu.memory_space<vmem>>) attributes {dimension_semantics = [#tpu.dimension_semantics<parallel>], iteration_bounds = array<i64: 1>, scalar_prefetch = 0 : i64, scratch_operands = 0 : i64, tpu.core_type = #tpu.core_type<tc>, window_params = [{transform_indices = @transform_0, window_bounds = array<i64: 32, 4>}, {transform_indices = @transform_1, window_bounds = array<i64: 2, 8, 8>}, {pipeline_mode = #tpu.pipeline_mode<synchronous>, transform_indices = @transform_2, window_bounds = array<i64: 4, 32>}, {pipeline_mode = #tpu.pipeline_mode<synchronous>, transform_indices = @transform_3, window_bounds = array<i64: 1, 32>}, {pipeline_mode = #tpu.pipeline_mode<synchronous>, transform_indices = @transform_4, window_bounds = array<i64: 8, 96>}, {pipeline_mode = #tpu.pipeline_mode<synchronous>, transform_indices = @transform_5, window_bounds = array<i64: 32, 96>}, {pipeline_mode = #tpu.pipeline_mode<synchronous>, transform_indices = @transform_6, window_bounds = array<i64: 1, 96>}, {pipeline_mode = #tpu.pipeline_mode<synchronous>, transform_indices = @transform_7, window_bounds = array<i64: 1, 32>}, {pipeline_mode = #tpu.pipeline_mode<synchronous>, transform_indices = @transform_8, window_bounds = array<i64: 32, 8>}, {pipeline_mode = #tpu.pipeline_mode<synchronous>, transform_indices = @transform_9, window_bounds = array<i64: 1, 8>}, {transform_indices = @transform_10, window_bounds = array<i64: 2, 8, 8>}, {transform_indices = @transform_11, window_bounds = array<i64: 2, 8>}, {transform_indices = @transform_12, window_bounds = array<i64: 2, 8>}]} {
    %c0 = arith.constant 0 : index
    %c0_0 = arith.constant 0 : index
    %0 = vector.load %arg1[%c0, %c0_0] : memref<32x4xf32, #tpu.memory_space<vmem>>, vector<32x4xf32>
    %c0_1 = arith.constant 0 : index
    %c0_2 = arith.constant 0 : index
    %1 = vector.load %arg3[%c0_1, %c0_2] : memref<4x32xf32, #tpu.memory_space<vmem>>, vector<4x32xf32>
    %cst = arith.constant dense<0.000000e+00> : vector<32x32xf32>
    %2 = tpu.matmul %0, %1, %cst {dimension_numbers = #tpu.dot_dimension_numbers<[1], [0], [0], [1], [0, 0, 1, 1], [], []>} : vector<32x4xf32>, vector<4x32xf32>, vector<32x32xf32> -> vector<32x32xf32>
    %c0_3 = arith.constant 0 : index
    %c0_4 = arith.constant 0 : index
    %3 = vector.load %arg4[%c0_3, %c0_4] : memref<1x32xf32, #tpu.memory_space<vmem>>, vector<1x32xf32>
    %4 = vector.broadcast %3 : vector<1x32xf32> to vector<32x32xf32>
    %5 = arith.addf %2, %4 : vector<32x32xf32>
    %cst_5 = arith.constant 0.000000e+00 : f32
    %6 = vector.broadcast %cst_5 : f32 to vector<32x32xf32>
    %7 = arith.cmpf ogt, %5, %6 : vector<32x32xf32>
    %cst_6 = arith.constant 0.00999999977 : f32
    %8 = vector.broadcast %cst_6 : f32 to vector<32x32xf32>
    %9 = arith.mulf %8, %5 : vector<32x32xf32>
    %10 = arith.select %7, %5, %9 : vector<32x32xi1>, vector<32x32xf32>
    %11 = vector.shape_cast %10 : vector<32x32xf32> to vector<2x16x32xf32>
    %12 = vector.extract_strided_slice %11 {offsets = [0, 0, 0], sizes = [2, 8, 32], strides = [1, 1, 1]} : vector<2x16x32xf32> to vector<2x8x32xf32>
    %13 = vector.extract_strided_slice %11 {offsets = [0, 8, 0], sizes = [2, 8, 32], strides = [1, 1, 1]} : vector<2x16x32xf32> to vector<2x8x32xf32>
    %cst_7 = arith.constant dense<0.000000e+00> : vector<2x8x8xf32>
    %14 = tpu.matmul %12, %13, %cst_7 {dimension_numbers = #tpu.dot_dimension_numbers<[2], [2], [1], [1], [0, 0, 0, 1, 1, 1], [0], [0]>} : vector<2x8x32xf32>, vector<2x8x32xf32>, vector<2x8x8xf32> -> vector<2x8x8xf32>
    %15 = vector.shape_cast %14 : vector<2x8x8xf32> to vector<16x8xf32>
    %c0_8 = arith.constant 0 : index
    %c0_9 = arith.constant 0 : index
    %16 = vector.load %arg5[%c0_8, %c0_9] : memref<8x96xf32, #tpu.memory_space<vmem>>, vector<8x96xf32>
    %cst_10 = arith.constant dense<0.000000e+00> : vector<16x96xf32>
    %17 = tpu.matmul %15, %16, %cst_10 {dimension_numbers = #tpu.dot_dimension_numbers<[1], [0], [0], [1], [0, 0, 1, 1], [], []>} : vector<16x8xf32>, vector<8x96xf32>, vector<16x96xf32> -> vector<16x96xf32>
    %c0_11 = arith.constant 0 : index
    %c0_12 = arith.constant 0 : index
    %18 = vector.load %arg7[%c0_11, %c0_12] : memref<1x96xf32, #tpu.memory_space<vmem>>, vector<1x96xf32>
    %19 = vector.broadcast %18 : vector<1x96xf32> to vector<16x96xf32>
    %20 = arith.addf %17, %19 : vector<16x96xf32>
    %21 = vector.shape_cast %20 : vector<16x96xf32> to vector<2x8x96xf32>
    %c0_13 = arith.constant 0 : index
    %c0_14 = arith.constant 0 : index
    %22 = vector.load %arg6[%c0_13, %c0_14] : memref<32x96xf32, #tpu.memory_space<vmem>>, vector<32x96xf32>
    %c0_15 = arith.constant 0 : index
    %c0_16 = arith.constant 0 : index
    %23 = vector.load %arg8[%c0_15, %c0_16] : memref<1x32xf32, #tpu.memory_space<vmem>>, vector<1x32xf32>
    %c0_17 = arith.constant 0 : index
    %c0_18 = arith.constant 0 : index
    %24 = vector.load %arg9[%c0_17, %c0_18] : memref<32x8xf32, #tpu.memory_space<vmem>>, vector<32x8xf32>
    %c0_19 = arith.constant 0 : index
    %c0_20 = arith.constant 0 : index
    %25 = vector.load %arg10[%c0_19, %c0_20] : memref<1x8xf32, #tpu.memory_space<vmem>>, vector<1x8xf32>
    %c0_21 = arith.constant 0 : index
    %c0_22 = arith.constant 0 : index
    %c0_23 = arith.constant 0 : index
    %26 = vector.load %arg2[%c0_21, %c0_22, %c0_23] : memref<2x8x8xf32, #tpu.memory_space<vmem>>, vector<2x8x8xf32>
    %cst_24 = arith.constant 0.000000e+00 : f32
    %27 = vector.broadcast %cst_24 : f32 to vector<2x32xf32>
    %cst_25 = arith.constant 0.000000e+00 : f32
    %28 = vector.broadcast %cst_25 : f32 to vector<2x8xf32>
    %29 = tpu.iota {dimensions = array<i32: 1>} : vector<2x8xi32>
    %30 = vector.extract_strided_slice %21 {offsets = [0, 0, 0], sizes = [2, 1, 96], strides = [1, 1, 1]} : vector<2x8x96xf32> to vector<2x1x96xf32>
    %31 = vector.shape_cast %30 : vector<2x1x96xf32> to vector<2x96xf32>
    %cst_26 = arith.constant dense<0.000000e+00> : vector<2x96xf32>
    %32 = tpu.matmul %27, %22, %cst_26 {dimension_numbers = #tpu.dot_dimension_numbers<[1], [0], [0], [1], [0, 0, 1, 1], [], []>} : vector<2x32xf32>, vector<32x96xf32>, vector<2x96xf32> -> vector<2x96xf32>
    %33 = vector.extract_strided_slice %31 {offsets = [0, 0], sizes = [2, 64], strides = [1, 1]} : vector<2x96xf32> to vector<2x64xf32>
    %34 = vector.extract_strided_slice %32 {offsets = [0, 0], sizes = [2, 64], strides = [1, 1]} : vector<2x96xf32> to vector<2x64xf32>
    %35 = arith.addf %33, %34 : vector<2x64xf32>
    %cst_27 = arith.constant 0.000000e+00 : f32
    %36 = vector.broadcast %cst_27 : f32 to vector<2x64xf32>
    %37 = arith.subf %36, %35 : vector<2x64xf32>
    %38 = math.exp %37 : vector<2x64xf32>
    %cst_28 = arith.constant 1.000000e+00 : f32
    %39 = vector.broadcast %cst_28 : f32 to vector<2x64xf32>
    %40 = arith.addf %39, %38 : vector<2x64xf32>
    %cst_29 = arith.constant 1.000000e+00 : f32
    %41 = vector.broadcast %cst_29 : f32 to vector<2x64xf32>
    %42 = arith.divf %41, %40 : vector<2x64xf32>
    %43 = vector.extract_strided_slice %42 {offsets = [0, 0], sizes = [2, 32], strides = [1, 1]} : vector<2x64xf32> to vector<2x32xf32>
    %44 = vector.extract_strided_slice %42 {offsets = [0, 32], sizes = [2, 32], strides = [1, 1]} : vector<2x64xf32> to vector<2x32xf32>
    %45 = vector.extract_strided_slice %31 {offsets = [0, 64], sizes = [2, 32], strides = [1, 1]} : vector<2x96xf32> to vector<2x32xf32>
    %46 = vector.extract_strided_slice %32 {offsets = [0, 64], sizes = [2, 32], strides = [1, 1]} : vector<2x96xf32> to vector<2x32xf32>
    %47 = vector.broadcast %23 : vector<1x32xf32> to vector<2x32xf32>
    %48 = arith.addf %46, %47 : vector<2x32xf32>
    %49 = arith.mulf %43, %48 : vector<2x32xf32>
    %50 = arith.addf %45, %49 : vector<2x32xf32>
    %51 = math.tanh %50 : vector<2x32xf32>
    %cst_30 = arith.constant 1.000000e+00 : f32
    %52 = vector.broadcast %cst_30 : f32 to vector<2x32xf32>
    %53 = arith.subf %52, %44 : vector<2x32xf32>
    %54 = arith.mulf %53, %51 : vector<2x32xf32>
    %55 = arith.mulf %44, %27 : vector<2x32xf32>
    %56 = arith.addf %54, %55 : vector<2x32xf32>
    %cst_31 = arith.constant dense<0.000000e+00> : vector<2x8xf32>
    %57 = tpu.matmul %56, %24, %cst_31 {dimension_numbers = #tpu.dot_dimension_numbers<[1], [0], [0], [1], [0, 0, 1, 1], [], []>} : vector<2x32xf32>, vector<32x8xf32>, vector<2x8xf32> -> vector<2x8xf32>
    %58 = vector.broadcast %25 : vector<1x8xf32> to vector<2x8xf32>
    %59 = arith.addf %57, %58 : vector<2x8xf32>
    %60 = math.tanh %59 : vector<2x8xf32>
    %cst_32 = arith.constant 1.000000e+01 : f32
    %61 = vector.broadcast %cst_32 : f32 to vector<2x8xf32>
    %62 = arith.mulf %61, %60 : vector<2x8xf32>
    %cst_33 = arith.constant 0.000000e+00 : f32
    %63 = vector.broadcast %cst_33 : f32 to vector<2x8xf32>
    %64 = arith.cmpf ogt, %28, %63 : vector<2x8xf32>
    %cst_34 = arith.constant 0xFF800000 : f32
    %65 = vector.broadcast %cst_34 : f32 to vector<2x8xf32>
    %66 = arith.select %64, %65, %62 : vector<2x8xi1>, vector<2x8xf32>
    %cst_35 = arith.constant dense<0xFF800000> : vector<2xf32>
    %67 = vector.multi_reduction <maximumf>, %66, %cst_35 [1] : vector<2x8xf32> to vector<2xf32>
    %68 = vector.shape_cast %67 : vector<2xf32> to vector<2x1xf32>
    %69 = vector.broadcast %68 : vector<2x1xf32> to vector<2x8xf32>
    %70 = arith.subf %66, %69 : vector<2x8xf32>
    %71 = math.exp %70 : vector<2x8xf32>
    %cst_36 = arith.constant dense<0.000000e+00> : vector<2xf32>
    %72 = vector.multi_reduction <add>, %71, %cst_36 [1] : vector<2x8xf32> to vector<2xf32>
    %73 = vector.shape_cast %72 : vector<2xf32> to vector<2x1xf32>
    %74 = math.log %73 : vector<2x1xf32>
    %75 = arith.addf %68, %74 : vector<2x1xf32>
    %76 = vector.broadcast %75 : vector<2x1xf32> to vector<2x8xf32>
    %77 = arith.subf %66, %76 : vector<2x8xf32>
    %78 = vector.extract_strided_slice %26 {offsets = [0, 0, 0], sizes = [2, 1, 8], strides = [1, 1, 1]} : vector<2x8x8xf32> to vector<2x1x8xf32>
    %79 = vector.shape_cast %78 : vector<2x1x8xf32> to vector<2x8xf32>
    %80 = arith.addf %77, %79 : vector<2x8xf32>
    %cst_37 = arith.constant dense<0xFF800000> : vector<2xf32>
    %81 = vector.multi_reduction <maximumf>, %80, %cst_37 [1] : vector<2x8xf32> to vector<2xf32>
    %82 = vector.shape_cast %81 : vector<2xf32> to vector<2x1xf32>
    %83 = vector.broadcast %82 : vector<2x1xf32> to vector<2x8xf32>
    %84 = arith.cmpf oeq, %80, %83 : vector<2x8xf32>
    %c8_i32 = arith.constant 8 : i32
    %85 = vector.broadcast %c8_i32 : i32 to vector<2x8xi32>
    %86 = arith.select %84, %29, %85 : vector<2x8xi1>, vector<2x8xi32>
    %cst_38 = arith.constant dense<2147483647> : vector<2xi32>
    %87 = vector.multi_reduction <minsi>, %86, %cst_38 [1] : vector<2x8xi32> to vector<2xi32>
    %88 = vector.shape_cast %87 : vector<2xi32> to vector<2x1xi32>
    %89 = vector.broadcast %88 : vector<2x1xi32> to vector<2x8xi32>
    %90 = arith.cmpi eq, %29, %89 : vector<2x8xi32>
    %cst_39 = arith.constant 0.000000e+00 : f32
    %91 = vector.broadcast %cst_39 : f32 to vector<2x8xf32>
    %92 = arith.select %90, %77, %91 : vector<2x8xi1>, vector<2x8xf32>
    %cst_40 = arith.constant dense<0.000000e+00> : vector<2xf32>
    %93 = vector.multi_reduction <add>, %92, %cst_40 [1] : vector<2x8xf32> to vector<2xf32>
    %94 = vector.shape_cast %93 : vector<2xf32> to vector<2x1xf32>
    %95 = arith.extui %90 : vector<2x8xi1> to vector<2x8xi32>
    %96 = arith.sitofp %95 : vector<2x8xi32> to vector<2x8xf32>
    %97 = arith.maximumf %28, %96 : vector<2x8xf32>
    %98 = vector.extract_strided_slice %21 {offsets = [0, 1, 0], sizes = [2, 1, 96], strides = [1, 1, 1]} : vector<2x8x96xf32> to vector<2x1x96xf32>
    %99 = vector.shape_cast %98 : vector<2x1x96xf32> to vector<2x96xf32>
    %cst_41 = arith.constant dense<0.000000e+00> : vector<2x96xf32>
    %100 = tpu.matmul %56, %22, %cst_41 {dimension_numbers = #tpu.dot_dimension_numbers<[1], [0], [0], [1], [0, 0, 1, 1], [], []>} : vector<2x32xf32>, vector<32x96xf32>, vector<2x96xf32> -> vector<2x96xf32>
    %101 = vector.extract_strided_slice %99 {offsets = [0, 0], sizes = [2, 64], strides = [1, 1]} : vector<2x96xf32> to vector<2x64xf32>
    %102 = vector.extract_strided_slice %100 {offsets = [0, 0], sizes = [2, 64], strides = [1, 1]} : vector<2x96xf32> to vector<2x64xf32>
    %103 = arith.addf %101, %102 : vector<2x64xf32>
    %cst_42 = arith.constant 0.000000e+00 : f32
    %104 = vector.broadcast %cst_42 : f32 to vector<2x64xf32>
    %105 = arith.subf %104, %103 : vector<2x64xf32>
    %106 = math.exp %105 : vector<2x64xf32>
    %cst_43 = arith.constant 1.000000e+00 : f32
    %107 = vector.broadcast %cst_43 : f32 to vector<2x64xf32>
    %108 = arith.addf %107, %106 : vector<2x64xf32>
    %cst_44 = arith.constant 1.000000e+00 : f32
    %109 = vector.broadcast %cst_44 : f32 to vector<2x64xf32>
    %110 = arith.divf %109, %108 : vector<2x64xf32>
    %111 = vector.extract_strided_slice %110 {offsets = [0, 0], sizes = [2, 32], strides = [1, 1]} : vector<2x64xf32> to vector<2x32xf32>
    %112 = vector.extract_strided_slice %110 {offsets = [0, 32], sizes = [2, 32], strides = [1, 1]} : vector<2x64xf32> to vector<2x32xf32>
    %113 = vector.extract_strided_slice %99 {offsets = [0, 64], sizes = [2, 32], strides = [1, 1]} : vector<2x96xf32> to vector<2x32xf32>
    %114 = vector.extract_strided_slice %100 {offsets = [0, 64], sizes = [2, 32], strides = [1, 1]} : vector<2x96xf32> to vector<2x32xf32>
    %115 = vector.broadcast %23 : vector<1x32xf32> to vector<2x32xf32>
    %116 = arith.addf %114, %115 : vector<2x32xf32>
    %117 = arith.mulf %111, %116 : vector<2x32xf32>
    %118 = arith.addf %113, %117 : vector<2x32xf32>
    %119 = math.tanh %118 : vector<2x32xf32>
    %cst_45 = arith.constant 1.000000e+00 : f32
    %120 = vector.broadcast %cst_45 : f32 to vector<2x32xf32>
    %121 = arith.subf %120, %112 : vector<2x32xf32>
    %122 = arith.mulf %121, %119 : vector<2x32xf32>
    %123 = arith.mulf %112, %56 : vector<2x32xf32>
    %124 = arith.addf %122, %123 : vector<2x32xf32>
    %cst_46 = arith.constant dense<0.000000e+00> : vector<2x8xf32>
    %125 = tpu.matmul %124, %24, %cst_46 {dimension_numbers = #tpu.dot_dimension_numbers<[1], [0], [0], [1], [0, 0, 1, 1], [], []>} : vector<2x32xf32>, vector<32x8xf32>, vector<2x8xf32> -> vector<2x8xf32>
    %126 = vector.broadcast %25 : vector<1x8xf32> to vector<2x8xf32>
    %127 = arith.addf %125, %126 : vector<2x8xf32>
    %128 = math.tanh %127 : vector<2x8xf32>
    %cst_47 = arith.constant 1.000000e+01 : f32
    %129 = vector.broadcast %cst_47 : f32 to vector<2x8xf32>
    %130 = arith.mulf %129, %128 : vector<2x8xf32>
    %cst_48 = arith.constant 0.000000e+00 : f32
    %131 = vector.broadcast %cst_48 : f32 to vector<2x8xf32>
    %132 = arith.cmpf ogt, %97, %131 : vector<2x8xf32>
    %cst_49 = arith.constant 0xFF800000 : f32
    %133 = vector.broadcast %cst_49 : f32 to vector<2x8xf32>
    %134 = arith.select %132, %133, %130 : vector<2x8xi1>, vector<2x8xf32>
    %cst_50 = arith.constant dense<0xFF800000> : vector<2xf32>
    %135 = vector.multi_reduction <maximumf>, %134, %cst_50 [1] : vector<2x8xf32> to vector<2xf32>
    %136 = vector.shape_cast %135 : vector<2xf32> to vector<2x1xf32>
    %137 = vector.broadcast %136 : vector<2x1xf32> to vector<2x8xf32>
    %138 = arith.subf %134, %137 : vector<2x8xf32>
    %139 = math.exp %138 : vector<2x8xf32>
    %cst_51 = arith.constant dense<0.000000e+00> : vector<2xf32>
    %140 = vector.multi_reduction <add>, %139, %cst_51 [1] : vector<2x8xf32> to vector<2xf32>
    %141 = vector.shape_cast %140 : vector<2xf32> to vector<2x1xf32>
    %142 = math.log %141 : vector<2x1xf32>
    %143 = arith.addf %136, %142 : vector<2x1xf32>
    %144 = vector.broadcast %143 : vector<2x1xf32> to vector<2x8xf32>
    %145 = arith.subf %134, %144 : vector<2x8xf32>
    %146 = vector.extract_strided_slice %26 {offsets = [0, 1, 0], sizes = [2, 1, 8], strides = [1, 1, 1]} : vector<2x8x8xf32> to vector<2x1x8xf32>
    %147 = vector.shape_cast %146 : vector<2x1x8xf32> to vector<2x8xf32>
    %148 = arith.addf %145, %147 : vector<2x8xf32>
    %cst_52 = arith.constant dense<0xFF800000> : vector<2xf32>
    %149 = vector.multi_reduction <maximumf>, %148, %cst_52 [1] : vector<2x8xf32> to vector<2xf32>
    %150 = vector.shape_cast %149 : vector<2xf32> to vector<2x1xf32>
    %151 = vector.broadcast %150 : vector<2x1xf32> to vector<2x8xf32>
    %152 = arith.cmpf oeq, %148, %151 : vector<2x8xf32>
    %c8_i32_53 = arith.constant 8 : i32
    %153 = vector.broadcast %c8_i32_53 : i32 to vector<2x8xi32>
    %154 = arith.select %152, %29, %153 : vector<2x8xi1>, vector<2x8xi32>
    %cst_54 = arith.constant dense<2147483647> : vector<2xi32>
    %155 = vector.multi_reduction <minsi>, %154, %cst_54 [1] : vector<2x8xi32> to vector<2xi32>
    %156 = vector.shape_cast %155 : vector<2xi32> to vector<2x1xi32>
    %157 = vector.broadcast %156 : vector<2x1xi32> to vector<2x8xi32>
    %158 = arith.cmpi eq, %29, %157 : vector<2x8xi32>
    %cst_55 = arith.constant 0.000000e+00 : f32
    %159 = vector.broadcast %cst_55 : f32 to vector<2x8xf32>
    %160 = arith.select %158, %145, %159 : vector<2x8xi1>, vector<2x8xf32>
    %cst_56 = arith.constant dense<0.000000e+00> : vector<2xf32>
    %161 = vector.multi_reduction <add>, %160, %cst_56 [1] : vector<2x8xf32> to vector<2xf32>
    %162 = vector.shape_cast %161 : vector<2xf32> to vector<2x1xf32>
    %163 = arith.extui %158 : vector<2x8xi1> to vector<2x8xi32>
    %164 = arith.sitofp %163 : vector<2x8xi32> to vector<2x8xf32>
    %165 = arith.maximumf %97, %164 : vector<2x8xf32>
    %166 = vector.extract_strided_slice %21 {offsets = [0, 2, 0], sizes = [2, 1, 96], strides = [1, 1, 1]} : vector<2x8x96xf32> to vector<2x1x96xf32>
    %167 = vector.shape_cast %166 : vector<2x1x96xf32> to vector<2x96xf32>
    %cst_57 = arith.constant dense<0.000000e+00> : vector<2x96xf32>
    %168 = tpu.matmul %124, %22, %cst_57 {dimension_numbers = #tpu.dot_dimension_numbers<[1], [0], [0], [1], [0, 0, 1, 1], [], []>} : vector<2x32xf32>, vector<32x96xf32>, vector<2x96xf32> -> vector<2x96xf32>
    %169 = vector.extract_strided_slice %167 {offsets = [0, 0], sizes = [2, 64], strides = [1, 1]} : vector<2x96xf32> to vector<2x64xf32>
    %170 = vector.extract_strided_slice %168 {offsets = [0, 0], sizes = [2, 64], strides = [1, 1]} : vector<2x96xf32> to vector<2x64xf32>
    %171 = arith.addf %169, %170 : vector<2x64xf32>
    %cst_58 = arith.constant 0.000000e+00 : f32
    %172 = vector.broadcast %cst_58 : f32 to vector<2x64xf32>
    %173 = arith.subf %172, %171 : vector<2x64xf32>
    %174 = math.exp %173 : vector<2x64xf32>
    %cst_59 = arith.constant 1.000000e+00 : f32
    %175 = vector.broadcast %cst_59 : f32 to vector<2x64xf32>
    %176 = arith.addf %175, %174 : vector<2x64xf32>
    %cst_60 = arith.constant 1.000000e+00 : f32
    %177 = vector.broadcast %cst_60 : f32 to vector<2x64xf32>
    %178 = arith.divf %177, %176 : vector<2x64xf32>
    %179 = vector.extract_strided_slice %178 {offsets = [0, 0], sizes = [2, 32], strides = [1, 1]} : vector<2x64xf32> to vector<2x32xf32>
    %180 = vector.extract_strided_slice %178 {offsets = [0, 32], sizes = [2, 32], strides = [1, 1]} : vector<2x64xf32> to vector<2x32xf32>
    %181 = vector.extract_strided_slice %167 {offsets = [0, 64], sizes = [2, 32], strides = [1, 1]} : vector<2x96xf32> to vector<2x32xf32>
    %182 = vector.extract_strided_slice %168 {offsets = [0, 64], sizes = [2, 32], strides = [1, 1]} : vector<2x96xf32> to vector<2x32xf32>
    %183 = vector.broadcast %23 : vector<1x32xf32> to vector<2x32xf32>
    %184 = arith.addf %182, %183 : vector<2x32xf32>
    %185 = arith.mulf %179, %184 : vector<2x32xf32>
    %186 = arith.addf %181, %185 : vector<2x32xf32>
    %187 = math.tanh %186 : vector<2x32xf32>
    %cst_61 = arith.constant 1.000000e+00 : f32
    %188 = vector.broadcast %cst_61 : f32 to vector<2x32xf32>
    %189 = arith.subf %188, %180 : vector<2x32xf32>
    %190 = arith.mulf %189, %187 : vector<2x32xf32>
    %191 = arith.mulf %180, %124 : vector<2x32xf32>
    %192 = arith.addf %190, %191 : vector<2x32xf32>
    %cst_62 = arith.constant dense<0.000000e+00> : vector<2x8xf32>
    %193 = tpu.matmul %192, %24, %cst_62 {dimension_numbers = #tpu.dot_dimension_numbers<[1], [0], [0], [1], [0, 0, 1, 1], [], []>} : vector<2x32xf32>, vector<32x8xf32>, vector<2x8xf32> -> vector<2x8xf32>
    %194 = vector.broadcast %25 : vector<1x8xf32> to vector<2x8xf32>
    %195 = arith.addf %193, %194 : vector<2x8xf32>
    %196 = math.tanh %195 : vector<2x8xf32>
    %cst_63 = arith.constant 1.000000e+01 : f32
    %197 = vector.broadcast %cst_63 : f32 to vector<2x8xf32>
    %198 = arith.mulf %197, %196 : vector<2x8xf32>
    %cst_64 = arith.constant 0.000000e+00 : f32
    %199 = vector.broadcast %cst_64 : f32 to vector<2x8xf32>
    %200 = arith.cmpf ogt, %165, %199 : vector<2x8xf32>
    %cst_65 = arith.constant 0xFF800000 : f32
    %201 = vector.broadcast %cst_65 : f32 to vector<2x8xf32>
    %202 = arith.select %200, %201, %198 : vector<2x8xi1>, vector<2x8xf32>
    %cst_66 = arith.constant dense<0xFF800000> : vector<2xf32>
    %203 = vector.multi_reduction <maximumf>, %202, %cst_66 [1] : vector<2x8xf32> to vector<2xf32>
    %204 = vector.shape_cast %203 : vector<2xf32> to vector<2x1xf32>
    %205 = vector.broadcast %204 : vector<2x1xf32> to vector<2x8xf32>
    %206 = arith.subf %202, %205 : vector<2x8xf32>
    %207 = math.exp %206 : vector<2x8xf32>
    %cst_67 = arith.constant dense<0.000000e+00> : vector<2xf32>
    %208 = vector.multi_reduction <add>, %207, %cst_67 [1] : vector<2x8xf32> to vector<2xf32>
    %209 = vector.shape_cast %208 : vector<2xf32> to vector<2x1xf32>
    %210 = math.log %209 : vector<2x1xf32>
    %211 = arith.addf %204, %210 : vector<2x1xf32>
    %212 = vector.broadcast %211 : vector<2x1xf32> to vector<2x8xf32>
    %213 = arith.subf %202, %212 : vector<2x8xf32>
    %214 = vector.extract_strided_slice %26 {offsets = [0, 2, 0], sizes = [2, 1, 8], strides = [1, 1, 1]} : vector<2x8x8xf32> to vector<2x1x8xf32>
    %215 = vector.shape_cast %214 : vector<2x1x8xf32> to vector<2x8xf32>
    %216 = arith.addf %213, %215 : vector<2x8xf32>
    %cst_68 = arith.constant dense<0xFF800000> : vector<2xf32>
    %217 = vector.multi_reduction <maximumf>, %216, %cst_68 [1] : vector<2x8xf32> to vector<2xf32>
    %218 = vector.shape_cast %217 : vector<2xf32> to vector<2x1xf32>
    %219 = vector.broadcast %218 : vector<2x1xf32> to vector<2x8xf32>
    %220 = arith.cmpf oeq, %216, %219 : vector<2x8xf32>
    %c8_i32_69 = arith.constant 8 : i32
    %221 = vector.broadcast %c8_i32_69 : i32 to vector<2x8xi32>
    %222 = arith.select %220, %29, %221 : vector<2x8xi1>, vector<2x8xi32>
    %cst_70 = arith.constant dense<2147483647> : vector<2xi32>
    %223 = vector.multi_reduction <minsi>, %222, %cst_70 [1] : vector<2x8xi32> to vector<2xi32>
    %224 = vector.shape_cast %223 : vector<2xi32> to vector<2x1xi32>
    %225 = vector.broadcast %224 : vector<2x1xi32> to vector<2x8xi32>
    %226 = arith.cmpi eq, %29, %225 : vector<2x8xi32>
    %cst_71 = arith.constant 0.000000e+00 : f32
    %227 = vector.broadcast %cst_71 : f32 to vector<2x8xf32>
    %228 = arith.select %226, %213, %227 : vector<2x8xi1>, vector<2x8xf32>
    %cst_72 = arith.constant dense<0.000000e+00> : vector<2xf32>
    %229 = vector.multi_reduction <add>, %228, %cst_72 [1] : vector<2x8xf32> to vector<2xf32>
    %230 = vector.shape_cast %229 : vector<2xf32> to vector<2x1xf32>
    %231 = arith.extui %226 : vector<2x8xi1> to vector<2x8xi32>
    %232 = arith.sitofp %231 : vector<2x8xi32> to vector<2x8xf32>
    %233 = arith.maximumf %165, %232 : vector<2x8xf32>
    %234 = vector.extract_strided_slice %21 {offsets = [0, 3, 0], sizes = [2, 1, 96], strides = [1, 1, 1]} : vector<2x8x96xf32> to vector<2x1x96xf32>
    %235 = vector.shape_cast %234 : vector<2x1x96xf32> to vector<2x96xf32>
    %cst_73 = arith.constant dense<0.000000e+00> : vector<2x96xf32>
    %236 = tpu.matmul %192, %22, %cst_73 {dimension_numbers = #tpu.dot_dimension_numbers<[1], [0], [0], [1], [0, 0, 1, 1], [], []>} : vector<2x32xf32>, vector<32x96xf32>, vector<2x96xf32> -> vector<2x96xf32>
    %237 = vector.extract_strided_slice %235 {offsets = [0, 0], sizes = [2, 64], strides = [1, 1]} : vector<2x96xf32> to vector<2x64xf32>
    %238 = vector.extract_strided_slice %236 {offsets = [0, 0], sizes = [2, 64], strides = [1, 1]} : vector<2x96xf32> to vector<2x64xf32>
    %239 = arith.addf %237, %238 : vector<2x64xf32>
    %cst_74 = arith.constant 0.000000e+00 : f32
    %240 = vector.broadcast %cst_74 : f32 to vector<2x64xf32>
    %241 = arith.subf %240, %239 : vector<2x64xf32>
    %242 = math.exp %241 : vector<2x64xf32>
    %cst_75 = arith.constant 1.000000e+00 : f32
    %243 = vector.broadcast %cst_75 : f32 to vector<2x64xf32>
    %244 = arith.addf %243, %242 : vector<2x64xf32>
    %cst_76 = arith.constant 1.000000e+00 : f32
    %245 = vector.broadcast %cst_76 : f32 to vector<2x64xf32>
    %246 = arith.divf %245, %244 : vector<2x64xf32>
    %247 = vector.extract_strided_slice %246 {offsets = [0, 0], sizes = [2, 32], strides = [1, 1]} : vector<2x64xf32> to vector<2x32xf32>
    %248 = vector.extract_strided_slice %246 {offsets = [0, 32], sizes = [2, 32], strides = [1, 1]} : vector<2x64xf32> to vector<2x32xf32>
    %249 = vector.extract_strided_slice %235 {offsets = [0, 64], sizes = [2, 32], strides = [1, 1]} : vector<2x96xf32> to vector<2x32xf32>
    %250 = vector.extract_strided_slice %236 {offsets = [0, 64], sizes = [2, 32], strides = [1, 1]} : vector<2x96xf32> to vector<2x32xf32>
    %251 = vector.broadcast %23 : vector<1x32xf32> to vector<2x32xf32>
    %252 = arith.addf %250, %251 : vector<2x32xf32>
    %253 = arith.mulf %247, %252 : vector<2x32xf32>
    %254 = arith.addf %249, %253 : vector<2x32xf32>
    %255 = math.tanh %254 : vector<2x32xf32>
    %cst_77 = arith.constant 1.000000e+00 : f32
    %256 = vector.broadcast %cst_77 : f32 to vector<2x32xf32>
    %257 = arith.subf %256, %248 : vector<2x32xf32>
    %258 = arith.mulf %257, %255 : vector<2x32xf32>
    %259 = arith.mulf %248, %192 : vector<2x32xf32>
    %260 = arith.addf %258, %259 : vector<2x32xf32>
    %cst_78 = arith.constant dense<0.000000e+00> : vector<2x8xf32>
    %261 = tpu.matmul %260, %24, %cst_78 {dimension_numbers = #tpu.dot_dimension_numbers<[1], [0], [0], [1], [0, 0, 1, 1], [], []>} : vector<2x32xf32>, vector<32x8xf32>, vector<2x8xf32> -> vector<2x8xf32>
    %262 = vector.broadcast %25 : vector<1x8xf32> to vector<2x8xf32>
    %263 = arith.addf %261, %262 : vector<2x8xf32>
    %264 = math.tanh %263 : vector<2x8xf32>
    %cst_79 = arith.constant 1.000000e+01 : f32
    %265 = vector.broadcast %cst_79 : f32 to vector<2x8xf32>
    %266 = arith.mulf %265, %264 : vector<2x8xf32>
    %cst_80 = arith.constant 0.000000e+00 : f32
    %267 = vector.broadcast %cst_80 : f32 to vector<2x8xf32>
    %268 = arith.cmpf ogt, %233, %267 : vector<2x8xf32>
    %cst_81 = arith.constant 0xFF800000 : f32
    %269 = vector.broadcast %cst_81 : f32 to vector<2x8xf32>
    %270 = arith.select %268, %269, %266 : vector<2x8xi1>, vector<2x8xf32>
    %cst_82 = arith.constant dense<0xFF800000> : vector<2xf32>
    %271 = vector.multi_reduction <maximumf>, %270, %cst_82 [1] : vector<2x8xf32> to vector<2xf32>
    %272 = vector.shape_cast %271 : vector<2xf32> to vector<2x1xf32>
    %273 = vector.broadcast %272 : vector<2x1xf32> to vector<2x8xf32>
    %274 = arith.subf %270, %273 : vector<2x8xf32>
    %275 = math.exp %274 : vector<2x8xf32>
    %cst_83 = arith.constant dense<0.000000e+00> : vector<2xf32>
    %276 = vector.multi_reduction <add>, %275, %cst_83 [1] : vector<2x8xf32> to vector<2xf32>
    %277 = vector.shape_cast %276 : vector<2xf32> to vector<2x1xf32>
    %278 = math.log %277 : vector<2x1xf32>
    %279 = arith.addf %272, %278 : vector<2x1xf32>
    %280 = vector.broadcast %279 : vector<2x1xf32> to vector<2x8xf32>
    %281 = arith.subf %270, %280 : vector<2x8xf32>
    %282 = vector.extract_strided_slice %26 {offsets = [0, 3, 0], sizes = [2, 1, 8], strides = [1, 1, 1]} : vector<2x8x8xf32> to vector<2x1x8xf32>
    %283 = vector.shape_cast %282 : vector<2x1x8xf32> to vector<2x8xf32>
    %284 = arith.addf %281, %283 : vector<2x8xf32>
    %cst_84 = arith.constant dense<0xFF800000> : vector<2xf32>
    %285 = vector.multi_reduction <maximumf>, %284, %cst_84 [1] : vector<2x8xf32> to vector<2xf32>
    %286 = vector.shape_cast %285 : vector<2xf32> to vector<2x1xf32>
    %287 = vector.broadcast %286 : vector<2x1xf32> to vector<2x8xf32>
    %288 = arith.cmpf oeq, %284, %287 : vector<2x8xf32>
    %c8_i32_85 = arith.constant 8 : i32
    %289 = vector.broadcast %c8_i32_85 : i32 to vector<2x8xi32>
    %290 = arith.select %288, %29, %289 : vector<2x8xi1>, vector<2x8xi32>
    %cst_86 = arith.constant dense<2147483647> : vector<2xi32>
    %291 = vector.multi_reduction <minsi>, %290, %cst_86 [1] : vector<2x8xi32> to vector<2xi32>
    %292 = vector.shape_cast %291 : vector<2xi32> to vector<2x1xi32>
    %293 = vector.broadcast %292 : vector<2x1xi32> to vector<2x8xi32>
    %294 = arith.cmpi eq, %29, %293 : vector<2x8xi32>
    %cst_87 = arith.constant 0.000000e+00 : f32
    %295 = vector.broadcast %cst_87 : f32 to vector<2x8xf32>
    %296 = arith.select %294, %281, %295 : vector<2x8xi1>, vector<2x8xf32>
    %cst_88 = arith.constant dense<0.000000e+00> : vector<2xf32>
    %297 = vector.multi_reduction <add>, %296, %cst_88 [1] : vector<2x8xf32> to vector<2xf32>
    %298 = vector.shape_cast %297 : vector<2xf32> to vector<2x1xf32>
    %299 = arith.extui %294 : vector<2x8xi1> to vector<2x8xi32>
    %300 = arith.sitofp %299 : vector<2x8xi32> to vector<2x8xf32>
    %301 = arith.maximumf %233, %300 : vector<2x8xf32>
    %302 = vector.extract_strided_slice %21 {offsets = [0, 4, 0], sizes = [2, 1, 96], strides = [1, 1, 1]} : vector<2x8x96xf32> to vector<2x1x96xf32>
    %303 = vector.shape_cast %302 : vector<2x1x96xf32> to vector<2x96xf32>
    %cst_89 = arith.constant dense<0.000000e+00> : vector<2x96xf32>
    %304 = tpu.matmul %260, %22, %cst_89 {dimension_numbers = #tpu.dot_dimension_numbers<[1], [0], [0], [1], [0, 0, 1, 1], [], []>} : vector<2x32xf32>, vector<32x96xf32>, vector<2x96xf32> -> vector<2x96xf32>
    %305 = vector.extract_strided_slice %303 {offsets = [0, 0], sizes = [2, 64], strides = [1, 1]} : vector<2x96xf32> to vector<2x64xf32>
    %306 = vector.extract_strided_slice %304 {offsets = [0, 0], sizes = [2, 64], strides = [1, 1]} : vector<2x96xf32> to vector<2x64xf32>
    %307 = arith.addf %305, %306 : vector<2x64xf32>
    %cst_90 = arith.constant 0.000000e+00 : f32
    %308 = vector.broadcast %cst_90 : f32 to vector<2x64xf32>
    %309 = arith.subf %308, %307 : vector<2x64xf32>
    %310 = math.exp %309 : vector<2x64xf32>
    %cst_91 = arith.constant 1.000000e+00 : f32
    %311 = vector.broadcast %cst_91 : f32 to vector<2x64xf32>
    %312 = arith.addf %311, %310 : vector<2x64xf32>
    %cst_92 = arith.constant 1.000000e+00 : f32
    %313 = vector.broadcast %cst_92 : f32 to vector<2x64xf32>
    %314 = arith.divf %313, %312 : vector<2x64xf32>
    %315 = vector.extract_strided_slice %314 {offsets = [0, 0], sizes = [2, 32], strides = [1, 1]} : vector<2x64xf32> to vector<2x32xf32>
    %316 = vector.extract_strided_slice %314 {offsets = [0, 32], sizes = [2, 32], strides = [1, 1]} : vector<2x64xf32> to vector<2x32xf32>
    %317 = vector.extract_strided_slice %303 {offsets = [0, 64], sizes = [2, 32], strides = [1, 1]} : vector<2x96xf32> to vector<2x32xf32>
    %318 = vector.extract_strided_slice %304 {offsets = [0, 64], sizes = [2, 32], strides = [1, 1]} : vector<2x96xf32> to vector<2x32xf32>
    %319 = vector.broadcast %23 : vector<1x32xf32> to vector<2x32xf32>
    %320 = arith.addf %318, %319 : vector<2x32xf32>
    %321 = arith.mulf %315, %320 : vector<2x32xf32>
    %322 = arith.addf %317, %321 : vector<2x32xf32>
    %323 = math.tanh %322 : vector<2x32xf32>
    %cst_93 = arith.constant 1.000000e+00 : f32
    %324 = vector.broadcast %cst_93 : f32 to vector<2x32xf32>
    %325 = arith.subf %324, %316 : vector<2x32xf32>
    %326 = arith.mulf %325, %323 : vector<2x32xf32>
    %327 = arith.mulf %316, %260 : vector<2x32xf32>
    %328 = arith.addf %326, %327 : vector<2x32xf32>
    %cst_94 = arith.constant dense<0.000000e+00> : vector<2x8xf32>
    %329 = tpu.matmul %328, %24, %cst_94 {dimension_numbers = #tpu.dot_dimension_numbers<[1], [0], [0], [1], [0, 0, 1, 1], [], []>} : vector<2x32xf32>, vector<32x8xf32>, vector<2x8xf32> -> vector<2x8xf32>
    %330 = vector.broadcast %25 : vector<1x8xf32> to vector<2x8xf32>
    %331 = arith.addf %329, %330 : vector<2x8xf32>
    %332 = math.tanh %331 : vector<2x8xf32>
    %cst_95 = arith.constant 1.000000e+01 : f32
    %333 = vector.broadcast %cst_95 : f32 to vector<2x8xf32>
    %334 = arith.mulf %333, %332 : vector<2x8xf32>
    %cst_96 = arith.constant 0.000000e+00 : f32
    %335 = vector.broadcast %cst_96 : f32 to vector<2x8xf32>
    %336 = arith.cmpf ogt, %301, %335 : vector<2x8xf32>
    %cst_97 = arith.constant 0xFF800000 : f32
    %337 = vector.broadcast %cst_97 : f32 to vector<2x8xf32>
    %338 = arith.select %336, %337, %334 : vector<2x8xi1>, vector<2x8xf32>
    %cst_98 = arith.constant dense<0xFF800000> : vector<2xf32>
    %339 = vector.multi_reduction <maximumf>, %338, %cst_98 [1] : vector<2x8xf32> to vector<2xf32>
    %340 = vector.shape_cast %339 : vector<2xf32> to vector<2x1xf32>
    %341 = vector.broadcast %340 : vector<2x1xf32> to vector<2x8xf32>
    %342 = arith.subf %338, %341 : vector<2x8xf32>
    %343 = math.exp %342 : vector<2x8xf32>
    %cst_99 = arith.constant dense<0.000000e+00> : vector<2xf32>
    %344 = vector.multi_reduction <add>, %343, %cst_99 [1] : vector<2x8xf32> to vector<2xf32>
    %345 = vector.shape_cast %344 : vector<2xf32> to vector<2x1xf32>
    %346 = math.log %345 : vector<2x1xf32>
    %347 = arith.addf %340, %346 : vector<2x1xf32>
    %348 = vector.broadcast %347 : vector<2x1xf32> to vector<2x8xf32>
    %349 = arith.subf %338, %348 : vector<2x8xf32>
    %350 = vector.extract_strided_slice %26 {offsets = [0, 4, 0], sizes = [2, 1, 8], strides = [1, 1, 1]} : vector<2x8x8xf32> to vector<2x1x8xf32>
    %351 = vector.shape_cast %350 : vector<2x1x8xf32> to vector<2x8xf32>
    %352 = arith.addf %349, %351 : vector<2x8xf32>
    %cst_100 = arith.constant dense<0xFF800000> : vector<2xf32>
    %353 = vector.multi_reduction <maximumf>, %352, %cst_100 [1] : vector<2x8xf32> to vector<2xf32>
    %354 = vector.shape_cast %353 : vector<2xf32> to vector<2x1xf32>
    %355 = vector.broadcast %354 : vector<2x1xf32> to vector<2x8xf32>
    %356 = arith.cmpf oeq, %352, %355 : vector<2x8xf32>
    %c8_i32_101 = arith.constant 8 : i32
    %357 = vector.broadcast %c8_i32_101 : i32 to vector<2x8xi32>
    %358 = arith.select %356, %29, %357 : vector<2x8xi1>, vector<2x8xi32>
    %cst_102 = arith.constant dense<2147483647> : vector<2xi32>
    %359 = vector.multi_reduction <minsi>, %358, %cst_102 [1] : vector<2x8xi32> to vector<2xi32>
    %360 = vector.shape_cast %359 : vector<2xi32> to vector<2x1xi32>
    %361 = vector.broadcast %360 : vector<2x1xi32> to vector<2x8xi32>
    %362 = arith.cmpi eq, %29, %361 : vector<2x8xi32>
    %cst_103 = arith.constant 0.000000e+00 : f32
    %363 = vector.broadcast %cst_103 : f32 to vector<2x8xf32>
    %364 = arith.select %362, %349, %363 : vector<2x8xi1>, vector<2x8xf32>
    %cst_104 = arith.constant dense<0.000000e+00> : vector<2xf32>
    %365 = vector.multi_reduction <add>, %364, %cst_104 [1] : vector<2x8xf32> to vector<2xf32>
    %366 = vector.shape_cast %365 : vector<2xf32> to vector<2x1xf32>
    %367 = arith.extui %362 : vector<2x8xi1> to vector<2x8xi32>
    %368 = arith.sitofp %367 : vector<2x8xi32> to vector<2x8xf32>
    %369 = arith.maximumf %301, %368 : vector<2x8xf32>
    %370 = vector.extract_strided_slice %21 {offsets = [0, 5, 0], sizes = [2, 1, 96], strides = [1, 1, 1]} : vector<2x8x96xf32> to vector<2x1x96xf32>
    %371 = vector.shape_cast %370 : vector<2x1x96xf32> to vector<2x96xf32>
    %cst_105 = arith.constant dense<0.000000e+00> : vector<2x96xf32>
    %372 = tpu.matmul %328, %22, %cst_105 {dimension_numbers = #tpu.dot_dimension_numbers<[1], [0], [0], [1], [0, 0, 1, 1], [], []>} : vector<2x32xf32>, vector<32x96xf32>, vector<2x96xf32> -> vector<2x96xf32>
    %373 = vector.extract_strided_slice %371 {offsets = [0, 0], sizes = [2, 64], strides = [1, 1]} : vector<2x96xf32> to vector<2x64xf32>
    %374 = vector.extract_strided_slice %372 {offsets = [0, 0], sizes = [2, 64], strides = [1, 1]} : vector<2x96xf32> to vector<2x64xf32>
    %375 = arith.addf %373, %374 : vector<2x64xf32>
    %cst_106 = arith.constant 0.000000e+00 : f32
    %376 = vector.broadcast %cst_106 : f32 to vector<2x64xf32>
    %377 = arith.subf %376, %375 : vector<2x64xf32>
    %378 = math.exp %377 : vector<2x64xf32>
    %cst_107 = arith.constant 1.000000e+00 : f32
    %379 = vector.broadcast %cst_107 : f32 to vector<2x64xf32>
    %380 = arith.addf %379, %378 : vector<2x64xf32>
    %cst_108 = arith.constant 1.000000e+00 : f32
    %381 = vector.broadcast %cst_108 : f32 to vector<2x64xf32>
    %382 = arith.divf %381, %380 : vector<2x64xf32>
    %383 = vector.extract_strided_slice %382 {offsets = [0, 0], sizes = [2, 32], strides = [1, 1]} : vector<2x64xf32> to vector<2x32xf32>
    %384 = vector.extract_strided_slice %382 {offsets = [0, 32], sizes = [2, 32], strides = [1, 1]} : vector<2x64xf32> to vector<2x32xf32>
    %385 = vector.extract_strided_slice %371 {offsets = [0, 64], sizes = [2, 32], strides = [1, 1]} : vector<2x96xf32> to vector<2x32xf32>
    %386 = vector.extract_strided_slice %372 {offsets = [0, 64], sizes = [2, 32], strides = [1, 1]} : vector<2x96xf32> to vector<2x32xf32>
    %387 = vector.broadcast %23 : vector<1x32xf32> to vector<2x32xf32>
    %388 = arith.addf %386, %387 : vector<2x32xf32>
    %389 = arith.mulf %383, %388 : vector<2x32xf32>
    %390 = arith.addf %385, %389 : vector<2x32xf32>
    %391 = math.tanh %390 : vector<2x32xf32>
    %cst_109 = arith.constant 1.000000e+00 : f32
    %392 = vector.broadcast %cst_109 : f32 to vector<2x32xf32>
    %393 = arith.subf %392, %384 : vector<2x32xf32>
    %394 = arith.mulf %393, %391 : vector<2x32xf32>
    %395 = arith.mulf %384, %328 : vector<2x32xf32>
    %396 = arith.addf %394, %395 : vector<2x32xf32>
    %cst_110 = arith.constant dense<0.000000e+00> : vector<2x8xf32>
    %397 = tpu.matmul %396, %24, %cst_110 {dimension_numbers = #tpu.dot_dimension_numbers<[1], [0], [0], [1], [0, 0, 1, 1], [], []>} : vector<2x32xf32>, vector<32x8xf32>, vector<2x8xf32> -> vector<2x8xf32>
    %398 = vector.broadcast %25 : vector<1x8xf32> to vector<2x8xf32>
    %399 = arith.addf %397, %398 : vector<2x8xf32>
    %400 = math.tanh %399 : vector<2x8xf32>
    %cst_111 = arith.constant 1.000000e+01 : f32
    %401 = vector.broadcast %cst_111 : f32 to vector<2x8xf32>
    %402 = arith.mulf %401, %400 : vector<2x8xf32>
    %cst_112 = arith.constant 0.000000e+00 : f32
    %403 = vector.broadcast %cst_112 : f32 to vector<2x8xf32>
    %404 = arith.cmpf ogt, %369, %403 : vector<2x8xf32>
    %cst_113 = arith.constant 0xFF800000 : f32
    %405 = vector.broadcast %cst_113 : f32 to vector<2x8xf32>
    %406 = arith.select %404, %405, %402 : vector<2x8xi1>, vector<2x8xf32>
    %cst_114 = arith.constant dense<0xFF800000> : vector<2xf32>
    %407 = vector.multi_reduction <maximumf>, %406, %cst_114 [1] : vector<2x8xf32> to vector<2xf32>
    %408 = vector.shape_cast %407 : vector<2xf32> to vector<2x1xf32>
    %409 = vector.broadcast %408 : vector<2x1xf32> to vector<2x8xf32>
    %410 = arith.subf %406, %409 : vector<2x8xf32>
    %411 = math.exp %410 : vector<2x8xf32>
    %cst_115 = arith.constant dense<0.000000e+00> : vector<2xf32>
    %412 = vector.multi_reduction <add>, %411, %cst_115 [1] : vector<2x8xf32> to vector<2xf32>
    %413 = vector.shape_cast %412 : vector<2xf32> to vector<2x1xf32>
    %414 = math.log %413 : vector<2x1xf32>
    %415 = arith.addf %408, %414 : vector<2x1xf32>
    %416 = vector.broadcast %415 : vector<2x1xf32> to vector<2x8xf32>
    %417 = arith.subf %406, %416 : vector<2x8xf32>
    %418 = vector.extract_strided_slice %26 {offsets = [0, 5, 0], sizes = [2, 1, 8], strides = [1, 1, 1]} : vector<2x8x8xf32> to vector<2x1x8xf32>
    %419 = vector.shape_cast %418 : vector<2x1x8xf32> to vector<2x8xf32>
    %420 = arith.addf %417, %419 : vector<2x8xf32>
    %cst_116 = arith.constant dense<0xFF800000> : vector<2xf32>
    %421 = vector.multi_reduction <maximumf>, %420, %cst_116 [1] : vector<2x8xf32> to vector<2xf32>
    %422 = vector.shape_cast %421 : vector<2xf32> to vector<2x1xf32>
    %423 = vector.broadcast %422 : vector<2x1xf32> to vector<2x8xf32>
    %424 = arith.cmpf oeq, %420, %423 : vector<2x8xf32>
    %c8_i32_117 = arith.constant 8 : i32
    %425 = vector.broadcast %c8_i32_117 : i32 to vector<2x8xi32>
    %426 = arith.select %424, %29, %425 : vector<2x8xi1>, vector<2x8xi32>
    %cst_118 = arith.constant dense<2147483647> : vector<2xi32>
    %427 = vector.multi_reduction <minsi>, %426, %cst_118 [1] : vector<2x8xi32> to vector<2xi32>
    %428 = vector.shape_cast %427 : vector<2xi32> to vector<2x1xi32>
    %429 = vector.broadcast %428 : vector<2x1xi32> to vector<2x8xi32>
    %430 = arith.cmpi eq, %29, %429 : vector<2x8xi32>
    %cst_119 = arith.constant 0.000000e+00 : f32
    %431 = vector.broadcast %cst_119 : f32 to vector<2x8xf32>
    %432 = arith.select %430, %417, %431 : vector<2x8xi1>, vector<2x8xf32>
    %cst_120 = arith.constant dense<0.000000e+00> : vector<2xf32>
    %433 = vector.multi_reduction <add>, %432, %cst_120 [1] : vector<2x8xf32> to vector<2xf32>
    %434 = vector.shape_cast %433 : vector<2xf32> to vector<2x1xf32>
    %435 = arith.extui %430 : vector<2x8xi1> to vector<2x8xi32>
    %436 = arith.sitofp %435 : vector<2x8xi32> to vector<2x8xf32>
    %437 = arith.maximumf %369, %436 : vector<2x8xf32>
    %438 = vector.extract_strided_slice %21 {offsets = [0, 6, 0], sizes = [2, 1, 96], strides = [1, 1, 1]} : vector<2x8x96xf32> to vector<2x1x96xf32>
    %439 = vector.shape_cast %438 : vector<2x1x96xf32> to vector<2x96xf32>
    %cst_121 = arith.constant dense<0.000000e+00> : vector<2x96xf32>
    %440 = tpu.matmul %396, %22, %cst_121 {dimension_numbers = #tpu.dot_dimension_numbers<[1], [0], [0], [1], [0, 0, 1, 1], [], []>} : vector<2x32xf32>, vector<32x96xf32>, vector<2x96xf32> -> vector<2x96xf32>
    %441 = vector.extract_strided_slice %439 {offsets = [0, 0], sizes = [2, 64], strides = [1, 1]} : vector<2x96xf32> to vector<2x64xf32>
    %442 = vector.extract_strided_slice %440 {offsets = [0, 0], sizes = [2, 64], strides = [1, 1]} : vector<2x96xf32> to vector<2x64xf32>
    %443 = arith.addf %441, %442 : vector<2x64xf32>
    %cst_122 = arith.constant 0.000000e+00 : f32
    %444 = vector.broadcast %cst_122 : f32 to vector<2x64xf32>
    %445 = arith.subf %444, %443 : vector<2x64xf32>
    %446 = math.exp %445 : vector<2x64xf32>
    %cst_123 = arith.constant 1.000000e+00 : f32
    %447 = vector.broadcast %cst_123 : f32 to vector<2x64xf32>
    %448 = arith.addf %447, %446 : vector<2x64xf32>
    %cst_124 = arith.constant 1.000000e+00 : f32
    %449 = vector.broadcast %cst_124 : f32 to vector<2x64xf32>
    %450 = arith.divf %449, %448 : vector<2x64xf32>
    %451 = vector.extract_strided_slice %450 {offsets = [0, 0], sizes = [2, 32], strides = [1, 1]} : vector<2x64xf32> to vector<2x32xf32>
    %452 = vector.extract_strided_slice %450 {offsets = [0, 32], sizes = [2, 32], strides = [1, 1]} : vector<2x64xf32> to vector<2x32xf32>
    %453 = vector.extract_strided_slice %439 {offsets = [0, 64], sizes = [2, 32], strides = [1, 1]} : vector<2x96xf32> to vector<2x32xf32>
    %454 = vector.extract_strided_slice %440 {offsets = [0, 64], sizes = [2, 32], strides = [1, 1]} : vector<2x96xf32> to vector<2x32xf32>
    %455 = vector.broadcast %23 : vector<1x32xf32> to vector<2x32xf32>
    %456 = arith.addf %454, %455 : vector<2x32xf32>
    %457 = arith.mulf %451, %456 : vector<2x32xf32>
    %458 = arith.addf %453, %457 : vector<2x32xf32>
    %459 = math.tanh %458 : vector<2x32xf32>
    %cst_125 = arith.constant 1.000000e+00 : f32
    %460 = vector.broadcast %cst_125 : f32 to vector<2x32xf32>
    %461 = arith.subf %460, %452 : vector<2x32xf32>
    %462 = arith.mulf %461, %459 : vector<2x32xf32>
    %463 = arith.mulf %452, %396 : vector<2x32xf32>
    %464 = arith.addf %462, %463 : vector<2x32xf32>
    %cst_126 = arith.constant dense<0.000000e+00> : vector<2x8xf32>
    %465 = tpu.matmul %464, %24, %cst_126 {dimension_numbers = #tpu.dot_dimension_numbers<[1], [0], [0], [1], [0, 0, 1, 1], [], []>} : vector<2x32xf32>, vector<32x8xf32>, vector<2x8xf32> -> vector<2x8xf32>
    %466 = vector.broadcast %25 : vector<1x8xf32> to vector<2x8xf32>
    %467 = arith.addf %465, %466 : vector<2x8xf32>
    %468 = math.tanh %467 : vector<2x8xf32>
    %cst_127 = arith.constant 1.000000e+01 : f32
    %469 = vector.broadcast %cst_127 : f32 to vector<2x8xf32>
    %470 = arith.mulf %469, %468 : vector<2x8xf32>
    %cst_128 = arith.constant 0.000000e+00 : f32
    %471 = vector.broadcast %cst_128 : f32 to vector<2x8xf32>
    %472 = arith.cmpf ogt, %437, %471 : vector<2x8xf32>
    %cst_129 = arith.constant 0xFF800000 : f32
    %473 = vector.broadcast %cst_129 : f32 to vector<2x8xf32>
    %474 = arith.select %472, %473, %470 : vector<2x8xi1>, vector<2x8xf32>
    %cst_130 = arith.constant dense<0xFF800000> : vector<2xf32>
    %475 = vector.multi_reduction <maximumf>, %474, %cst_130 [1] : vector<2x8xf32> to vector<2xf32>
    %476 = vector.shape_cast %475 : vector<2xf32> to vector<2x1xf32>
    %477 = vector.broadcast %476 : vector<2x1xf32> to vector<2x8xf32>
    %478 = arith.subf %474, %477 : vector<2x8xf32>
    %479 = math.exp %478 : vector<2x8xf32>
    %cst_131 = arith.constant dense<0.000000e+00> : vector<2xf32>
    %480 = vector.multi_reduction <add>, %479, %cst_131 [1] : vector<2x8xf32> to vector<2xf32>
    %481 = vector.shape_cast %480 : vector<2xf32> to vector<2x1xf32>
    %482 = math.log %481 : vector<2x1xf32>
    %483 = arith.addf %476, %482 : vector<2x1xf32>
    %484 = vector.broadcast %483 : vector<2x1xf32> to vector<2x8xf32>
    %485 = arith.subf %474, %484 : vector<2x8xf32>
    %486 = vector.extract_strided_slice %26 {offsets = [0, 6, 0], sizes = [2, 1, 8], strides = [1, 1, 1]} : vector<2x8x8xf32> to vector<2x1x8xf32>
    %487 = vector.shape_cast %486 : vector<2x1x8xf32> to vector<2x8xf32>
    %488 = arith.addf %485, %487 : vector<2x8xf32>
    %cst_132 = arith.constant dense<0xFF800000> : vector<2xf32>
    %489 = vector.multi_reduction <maximumf>, %488, %cst_132 [1] : vector<2x8xf32> to vector<2xf32>
    %490 = vector.shape_cast %489 : vector<2xf32> to vector<2x1xf32>
    %491 = vector.broadcast %490 : vector<2x1xf32> to vector<2x8xf32>
    %492 = arith.cmpf oeq, %488, %491 : vector<2x8xf32>
    %c8_i32_133 = arith.constant 8 : i32
    %493 = vector.broadcast %c8_i32_133 : i32 to vector<2x8xi32>
    %494 = arith.select %492, %29, %493 : vector<2x8xi1>, vector<2x8xi32>
    %cst_134 = arith.constant dense<2147483647> : vector<2xi32>
    %495 = vector.multi_reduction <minsi>, %494, %cst_134 [1] : vector<2x8xi32> to vector<2xi32>
    %496 = vector.shape_cast %495 : vector<2xi32> to vector<2x1xi32>
    %497 = vector.broadcast %496 : vector<2x1xi32> to vector<2x8xi32>
    %498 = arith.cmpi eq, %29, %497 : vector<2x8xi32>
    %cst_135 = arith.constant 0.000000e+00 : f32
    %499 = vector.broadcast %cst_135 : f32 to vector<2x8xf32>
    %500 = arith.select %498, %485, %499 : vector<2x8xi1>, vector<2x8xf32>
    %cst_136 = arith.constant dense<0.000000e+00> : vector<2xf32>
    %501 = vector.multi_reduction <add>, %500, %cst_136 [1] : vector<2x8xf32> to vector<2xf32>
    %502 = vector.shape_cast %501 : vector<2xf32> to vector<2x1xf32>
    %503 = arith.extui %498 : vector<2x8xi1> to vector<2x8xi32>
    %504 = arith.sitofp %503 : vector<2x8xi32> to vector<2x8xf32>
    %505 = arith.maximumf %437, %504 : vector<2x8xf32>
    %506 = vector.extract_strided_slice %21 {offsets = [0, 7, 0], sizes = [2, 1, 96], strides = [1, 1, 1]} : vector<2x8x96xf32> to vector<2x1x96xf32>
    %507 = vector.shape_cast %506 : vector<2x1x96xf32> to vector<2x96xf32>
    %cst_137 = arith.constant dense<0.000000e+00> : vector<2x96xf32>
    %508 = tpu.matmul %464, %22, %cst_137 {dimension_numbers = #tpu.dot_dimension_numbers<[1], [0], [0], [1], [0, 0, 1, 1], [], []>} : vector<2x32xf32>, vector<32x96xf32>, vector<2x96xf32> -> vector<2x96xf32>
    %509 = vector.extract_strided_slice %507 {offsets = [0, 0], sizes = [2, 64], strides = [1, 1]} : vector<2x96xf32> to vector<2x64xf32>
    %510 = vector.extract_strided_slice %508 {offsets = [0, 0], sizes = [2, 64], strides = [1, 1]} : vector<2x96xf32> to vector<2x64xf32>
    %511 = arith.addf %509, %510 : vector<2x64xf32>
    %cst_138 = arith.constant 0.000000e+00 : f32
    %512 = vector.broadcast %cst_138 : f32 to vector<2x64xf32>
    %513 = arith.subf %512, %511 : vector<2x64xf32>
    %514 = math.exp %513 : vector<2x64xf32>
    %cst_139 = arith.constant 1.000000e+00 : f32
    %515 = vector.broadcast %cst_139 : f32 to vector<2x64xf32>
    %516 = arith.addf %515, %514 : vector<2x64xf32>
    %cst_140 = arith.constant 1.000000e+00 : f32
    %517 = vector.broadcast %cst_140 : f32 to vector<2x64xf32>
    %518 = arith.divf %517, %516 : vector<2x64xf32>
    %519 = vector.extract_strided_slice %518 {offsets = [0, 0], sizes = [2, 32], strides = [1, 1]} : vector<2x64xf32> to vector<2x32xf32>
    %520 = vector.extract_strided_slice %518 {offsets = [0, 32], sizes = [2, 32], strides = [1, 1]} : vector<2x64xf32> to vector<2x32xf32>
    %521 = vector.extract_strided_slice %507 {offsets = [0, 64], sizes = [2, 32], strides = [1, 1]} : vector<2x96xf32> to vector<2x32xf32>
    %522 = vector.extract_strided_slice %508 {offsets = [0, 64], sizes = [2, 32], strides = [1, 1]} : vector<2x96xf32> to vector<2x32xf32>
    %523 = vector.broadcast %23 : vector<1x32xf32> to vector<2x32xf32>
    %524 = arith.addf %522, %523 : vector<2x32xf32>
    %525 = arith.mulf %519, %524 : vector<2x32xf32>
    %526 = arith.addf %521, %525 : vector<2x32xf32>
    %527 = math.tanh %526 : vector<2x32xf32>
    %cst_141 = arith.constant 1.000000e+00 : f32
    %528 = vector.broadcast %cst_141 : f32 to vector<2x32xf32>
    %529 = arith.subf %528, %520 : vector<2x32xf32>
    %530 = arith.mulf %529, %527 : vector<2x32xf32>
    %531 = arith.mulf %520, %464 : vector<2x32xf32>
    %532 = arith.addf %530, %531 : vector<2x32xf32>
    %cst_142 = arith.constant dense<0.000000e+00> : vector<2x8xf32>
    %533 = tpu.matmul %532, %24, %cst_142 {dimension_numbers = #tpu.dot_dimension_numbers<[1], [0], [0], [1], [0, 0, 1, 1], [], []>} : vector<2x32xf32>, vector<32x8xf32>, vector<2x8xf32> -> vector<2x8xf32>
    %534 = vector.broadcast %25 : vector<1x8xf32> to vector<2x8xf32>
    %535 = arith.addf %533, %534 : vector<2x8xf32>
    %536 = math.tanh %535 : vector<2x8xf32>
    %cst_143 = arith.constant 1.000000e+01 : f32
    %537 = vector.broadcast %cst_143 : f32 to vector<2x8xf32>
    %538 = arith.mulf %537, %536 : vector<2x8xf32>
    %cst_144 = arith.constant 0.000000e+00 : f32
    %539 = vector.broadcast %cst_144 : f32 to vector<2x8xf32>
    %540 = arith.cmpf ogt, %505, %539 : vector<2x8xf32>
    %cst_145 = arith.constant 0xFF800000 : f32
    %541 = vector.broadcast %cst_145 : f32 to vector<2x8xf32>
    %542 = arith.select %540, %541, %538 : vector<2x8xi1>, vector<2x8xf32>
    %cst_146 = arith.constant dense<0xFF800000> : vector<2xf32>
    %543 = vector.multi_reduction <maximumf>, %542, %cst_146 [1] : vector<2x8xf32> to vector<2xf32>
    %544 = vector.shape_cast %543 : vector<2xf32> to vector<2x1xf32>
    %545 = vector.broadcast %544 : vector<2x1xf32> to vector<2x8xf32>
    %546 = arith.subf %542, %545 : vector<2x8xf32>
    %547 = math.exp %546 : vector<2x8xf32>
    %cst_147 = arith.constant dense<0.000000e+00> : vector<2xf32>
    %548 = vector.multi_reduction <add>, %547, %cst_147 [1] : vector<2x8xf32> to vector<2xf32>
    %549 = vector.shape_cast %548 : vector<2xf32> to vector<2x1xf32>
    %550 = math.log %549 : vector<2x1xf32>
    %551 = arith.addf %544, %550 : vector<2x1xf32>
    %552 = vector.broadcast %551 : vector<2x1xf32> to vector<2x8xf32>
    %553 = arith.subf %542, %552 : vector<2x8xf32>
    %554 = vector.extract_strided_slice %26 {offsets = [0, 7, 0], sizes = [2, 1, 8], strides = [1, 1, 1]} : vector<2x8x8xf32> to vector<2x1x8xf32>
    %555 = vector.shape_cast %554 : vector<2x1x8xf32> to vector<2x8xf32>
    %556 = arith.addf %553, %555 : vector<2x8xf32>
    %cst_148 = arith.constant dense<0xFF800000> : vector<2xf32>
    %557 = vector.multi_reduction <maximumf>, %556, %cst_148 [1] : vector<2x8xf32> to vector<2xf32>
    %558 = vector.shape_cast %557 : vector<2xf32> to vector<2x1xf32>
    %559 = vector.broadcast %558 : vector<2x1xf32> to vector<2x8xf32>
    %560 = arith.cmpf oeq, %556, %559 : vector<2x8xf32>
    %c8_i32_149 = arith.constant 8 : i32
    %561 = vector.broadcast %c8_i32_149 : i32 to vector<2x8xi32>
    %562 = arith.select %560, %29, %561 : vector<2x8xi1>, vector<2x8xi32>
    %cst_150 = arith.constant dense<2147483647> : vector<2xi32>
    %563 = vector.multi_reduction <minsi>, %562, %cst_150 [1] : vector<2x8xi32> to vector<2xi32>
    %564 = vector.shape_cast %563 : vector<2xi32> to vector<2x1xi32>
    %565 = vector.broadcast %564 : vector<2x1xi32> to vector<2x8xi32>
    %566 = arith.cmpi eq, %29, %565 : vector<2x8xi32>
    %cst_151 = arith.constant 0.000000e+00 : f32
    %567 = vector.broadcast %cst_151 : f32 to vector<2x8xf32>
    %568 = arith.select %566, %553, %567 : vector<2x8xi1>, vector<2x8xf32>
    %cst_152 = arith.constant dense<0.000000e+00> : vector<2xf32>
    %569 = vector.multi_reduction <add>, %568, %cst_152 [1] : vector<2x8xf32> to vector<2xf32>
    %570 = vector.shape_cast %569 : vector<2xf32> to vector<2x1xf32>
    %571 = vector.shape_cast %77 : vector<2x8xf32> to vector<2x1x8xf32>
    %572 = vector.shape_cast %145 : vector<2x8xf32> to vector<2x1x8xf32>
    %573 = vector.shape_cast %213 : vector<2x8xf32> to vector<2x1x8xf32>
    %574 = vector.shape_cast %281 : vector<2x8xf32> to vector<2x1x8xf32>
    %575 = vector.shape_cast %349 : vector<2x8xf32> to vector<2x1x8xf32>
    %576 = vector.shape_cast %417 : vector<2x8xf32> to vector<2x1x8xf32>
    %577 = vector.shape_cast %485 : vector<2x8xf32> to vector<2x1x8xf32>
    %578 = vector.shape_cast %553 : vector<2x8xf32> to vector<2x1x8xf32>
    %579 = tpu.concatenate %571, %572, %573, %574, %575, %576, %577, %578 in 1 : vector<2x1x8xf32>, vector<2x1x8xf32>, vector<2x1x8xf32>, vector<2x1x8xf32>, vector<2x1x8xf32>, vector<2x1x8xf32>, vector<2x1x8xf32>, vector<2x1x8xf32> -> vector<2x8x8xf32>
    %c0_153 = arith.constant 0 : index
    %c0_154 = arith.constant 0 : index
    %c0_155 = arith.constant 0 : index
    %580 = vector.load %arg11[%c0_153, %c0_154, %c0_155] : memref<2x8x8xf32, #tpu.memory_space<vmem>>, vector<2x8x8xf32>
    tpu.vector_store %arg11[%c0_153, %c0_154, %c0_155], %579 {strides = array<i32>} : memref<2x8x8xf32, #tpu.memory_space<vmem>>, vector<2x8x8xf32>,
    %581 = tpu.concatenate %88, %156, %224, %292, %360, %428, %496, %564 in 1 : vector<2x1xi32>, vector<2x1xi32>, vector<2x1xi32>, vector<2x1xi32>, vector<2x1xi32>, vector<2x1xi32>, vector<2x1xi32>, vector<2x1xi32> -> vector<2x8xi32>
    %c0_156 = arith.constant 0 : index
    %c0_157 = arith.constant 0 : index
    %582 = vector.load %arg12[%c0_156, %c0_157] : memref<2x8xi32, #tpu.memory_space<vmem>>, vector<2x8xi32>
    tpu.vector_store %arg12[%c0_156, %c0_157], %581 {strides = array<i32>} : memref<2x8xi32, #tpu.memory_space<vmem>>, vector<2x8xi32>,
    %583 = tpu.concatenate %94, %162, %230, %298, %366, %434, %502, %570 in 1 : vector<2x1xf32>, vector<2x1xf32>, vector<2x1xf32>, vector<2x1xf32>, vector<2x1xf32>, vector<2x1xf32>, vector<2x1xf32>, vector<2x1xf32> -> vector<2x8xf32>
    %c0_158 = arith.constant 0 : index
    %c0_159 = arith.constant 0 : index
    %584 = vector.load %arg13[%c0_158, %c0_159] : memref<2x8xf32, #tpu.memory_space<vmem>>, vector<2x8xf32>
    tpu.vector_store %arg13[%c0_158, %c0_159], %583 {strides = array<i32>} : memref<2x8xf32, #tpu.memory_space<vmem>>, vector<2x8xf32>,
    return
  }
  func.func @transform_0(%arg0: i32) -> (i32, i32) {
    %c0_i32 = arith.constant 0 : i32
    %c0_i32_0 = arith.constant 0 : i32
    return %arg0, %c0_i32 : i32, i32
  }
  func.func @transform_1(%arg0: i32) -> (i32, i32, i32) {
    %c0_i32 = arith.constant 0 : i32
    %c0_i32_0 = arith.constant 0 : i32
    %c0_i32_1 = arith.constant 0 : i32
    return %arg0, %c0_i32, %c0_i32_0 : i32, i32, i32
  }
  func.func @transform_2(%arg0: i32) -> (i32, i32) {
    %c0_i32 = arith.constant 0 : i32
    %c0_i32_0 = arith.constant 0 : i32
    %c0_i32_1 = arith.constant 0 : i32
    return %c0_i32, %c0_i32_0 : i32, i32
  }
  func.func @transform_3(%arg0: i32) -> (i32, i32) {
    %c0_i32 = arith.constant 0 : i32
    %c0_i32_0 = arith.constant 0 : i32
    %c0_i32_1 = arith.constant 0 : i32
    return %c0_i32, %c0_i32_0 : i32, i32
  }
  func.func @transform_4(%arg0: i32) -> (i32, i32) {
    %c0_i32 = arith.constant 0 : i32
    %c0_i32_0 = arith.constant 0 : i32
    %c0_i32_1 = arith.constant 0 : i32
    return %c0_i32, %c0_i32_0 : i32, i32
  }
  func.func @transform_5(%arg0: i32) -> (i32, i32) {
    %c0_i32 = arith.constant 0 : i32
    %c0_i32_0 = arith.constant 0 : i32
    %c0_i32_1 = arith.constant 0 : i32
    return %c0_i32, %c0_i32_0 : i32, i32
  }
  func.func @transform_6(%arg0: i32) -> (i32, i32) {
    %c0_i32 = arith.constant 0 : i32
    %c0_i32_0 = arith.constant 0 : i32
    %c0_i32_1 = arith.constant 0 : i32
    return %c0_i32, %c0_i32_0 : i32, i32
  }
  func.func @transform_7(%arg0: i32) -> (i32, i32) {
    %c0_i32 = arith.constant 0 : i32
    %c0_i32_0 = arith.constant 0 : i32
    %c0_i32_1 = arith.constant 0 : i32
    return %c0_i32, %c0_i32_0 : i32, i32
  }
  func.func @transform_8(%arg0: i32) -> (i32, i32) {
    %c0_i32 = arith.constant 0 : i32
    %c0_i32_0 = arith.constant 0 : i32
    %c0_i32_1 = arith.constant 0 : i32
    return %c0_i32, %c0_i32_0 : i32, i32
  }
  func.func @transform_9(%arg0: i32) -> (i32, i32) {
    %c0_i32 = arith.constant 0 : i32
    %c0_i32_0 = arith.constant 0 : i32
    %c0_i32_1 = arith.constant 0 : i32
    return %c0_i32, %c0_i32_0 : i32, i32
  }
  func.func @transform_10(%arg0: i32) -> (i32, i32, i32) {
    %c0_i32 = arith.constant 0 : i32
    %c0_i32_0 = arith.constant 0 : i32
    %c0_i32_1 = arith.constant 0 : i32
    return %arg0, %c0_i32, %c0_i32_0 : i32, i32, i32
  }
  func.func @transform_11(%arg0: i32) -> (i32, i32) {
    %c0_i32 = arith.constant 0 : i32
    %c0_i32_0 = arith.constant 0 : i32
    return %arg0, %c0_i32 : i32, i32
  }
  func.func @transform_12(%arg0: i32) -> (i32, i32) {
    %c0_i32 = arith.constant 0 : i32
    %c0_i32_0 = arith.constant 0 : i32
    return %arg0, %c0_i32 : i32, i32
  }
}

</mosaic_0001>

<bundles_post_ra>
// kernel: matching_no_decoder_forward.1
= control target key start
LH: loop header
LB: loop body
LE: loop exit
PB: predicated region body
PF: predicated region fallthrough
CT: control target
= control target key end

     0   :  { %vm63_vm0 = vcmask 1043456   ;;  %vm4244_vm1 = vcmask 31744   ;;  %v3411_v5 = vmov 0.0   ;;  %vm3412_vm2 = vmmov 0   ;;  %s3414_s22 = smov 64   ;;  %s3415_s30 = smov 96   ;;  %s4231_s2 = inlined_call_operand.vmem [shape: f32[4,32], index: 2, kind: input, shape index: {}]   ;;  %s4232_s0 = inlined_call_operand.vmem [shape: f32[32,4], index: 0, kind: input, shape index: {}]   ;;  %s4233_s4 = inlined_call_operand.vmem [shape: f32[8,96], index: 4, kind: input, shape index: {}]   ;;  %s4234_s3 = inlined_call_operand.vmem [shape: f32[1,32], index: 3, kind: input, shape index: {}]   ;;  %s4235_s5 = inlined_call_operand.vmem [shape: f32[32,96], index: 5, kind: input, shape index: {}]   ;;  %s4236_s7 = inlined_call_operand.vmem [shape: f32[1,32], index: 7, kind: input, shape index: {}]   ;;  %s4237_s6 = inlined_call_operand.vmem [shape: f32[1,96], index: 6, kind: input, shape index: {}]   ;;  %s4238_s8 = inlined_call_operand.vmem [shape: f32[32,8], index: 8, kind: input, shape index: {}]   ;;  %s4239_s9 = inlined_call_operand.vmem [shape: f32[1,8], index: 9, kind: input, shape index: {}]   ;;  %s4240_s1 = inlined_call_operand.vmem [shape: f32[2,8,8], index: 1, kind: input, shape index: {}]   ;;  %s4241_s10 = inlined_call_operand.vmem [shape: f32[2,8,8], index: 10, kind: output, shape index: {0}]   ;;  %s4242_s11 = inlined_call_operand.vmem [shape: s32[2,8], index: 11, kind: output, shape index: {1}]   ;;  %s4243_s12 = inlined_call_operand.vmem [shape: f32[2,8], index: 12, kind: output, shape index: {2}]  }
   0x1   :  { %v42_v0 = vld [vmem:[%s4231_s2] sm:$0xf]  ;;  %v39_v2 = vld [vmem:[%s4232_s0 + $0x8] sm:$0xff]  ;;  %v40_v3 = vld [vmem:[%s4232_s0 + $0x10] sm:$0xff]  ;;  %2971 = vmatprep.subr.mxu1 %v3411_v5  ;;  %2973 = vmatprep.mubr.msk.f32.mxu1 %vm3412_vm2, %v3411_v5  ;;  %v3413_v7 = vmov 0.0|0.0   ;;  %vm164_vm4 = vcmask 261120  }
   0x2   :  { %v38_v1 = vld [vmem:[%s4232_s0] sm:$0xff]  ;;  %2963 = vmatprep.subr.msk.mxu0 %vm63_vm0, %v42_v0  ;;  %v41_v4 = vld [vmem:[%s4232_s0 + $0x18] sm:$0xff]  ;;  %v408_v22 = vld [vmem:[%s4235_s5 + $0x8] sm:$0xff]  ;;  %vm325_vm8 = vcmask 64512   ;;  %vm568_vm9 = vcmask 1041409   ;;  %vm648_vm10 = vcmask 58368  }
   0x3   :  { %2965 = vmatprep.mubr.msk.f32.mxu0 %vm4244_vm1, %v38_v1  ;;  %2964 = vmatpush3.msk.msra.mxu0 %vm63_vm0, %v42_v0  ;;  %v317_v6 = vld [vmem:[%s4233_s4] sm:$0xff]  ;;  %v409_v27 = vld [vmem:[%s4235_s5 + $0x10] sm:$0xff]  ;;  %v410_v28 = vld [vmem:[%s4235_s5 + $0x18] sm:$0xff] }
   0x4   :  { %2966 = vmatmul.mubr.msk.f32.vlgmr.msra.gmra.mrb[0].mxu0 %vm4244_vm1, %v39_v2  ;;  %2981 = vmatprep.subr.mxu0 %v317_v6  ;;  %v2834_v8 = vld [vmem:[%s4234_s3] ss:$0 sm:$0xff]  ;;  %v3536_v30 = vpack.c.bf16 %v410_v28, %v409_v27 }
   0x5   :  { %2968 = vmatprep.mubr.msk.f32.mxu0 %vm4244_vm1, %v40_v3  ;;  %2982 = vmatpush3.msra.mxu0 %v317_v6  ;;  %v407_v21 = vld [vmem:[%s4235_s5] sm:$0xff]  ;;  %v414_v6 = vld [vmem:[%s4238_s8 + $0x10] sm:$0xff] }
   0x6   :  { %3168 = vmatprep.subr.bf16.mxu0 %v3413_v7  ;;  %v3525_v26 = vpack.c.bf16 %v408_v22, %v407_v21  ;;  %v2847_v31 = vld [vmem:[%s4236_s7] ss:$0 sm:$0xff] }
   0x7   :  { %517 = vrot.lane.b32.xlu0 %v2847_v31, %s3414_s22  ;;  %v2844_v41 = vld [vmem:[%s4237_s6] ss:$0 sm:$0xff] }
   0x8   :  { %2969 = vmatmul.mubr.msk.f32.gmra.mrb[2].mxu0 %vm4244_vm1, %v41_v4  ;;  %v412_v3 = vld [vmem:[%s4238_s8] sm:$0xff]  ;;  %v413_v4 = vld [vmem:[%s4238_s8 + $0x8] sm:$0xff] }
  0x79   :  { %v3558_v36 = vpop.permute.xlu0 %517 }
  0xd7   :  { %v2967_v9 = vpop.f32.mrb[0].mxu0 }
  0xd8   :  { %v139_v10 = vadd.f32 %v2967_v9, %v2834_v8  ;;  %v133_v11 = vpop.f32.mrb[1].mxu0  ;;  %v415_v9 = vld [vmem:[%s4238_s8 + $0x18] sm:$0xff] }
  0xd9   :  { %v134_v12 = vadd.f32 %v2834_v8, %v133_v11 }
  0xda   :  { %v157_v13 = vmul.f32 0.01, %v139_v10  ;;  %vm153_vm3 = vcmp.gt.f32.partialorder %v139_v10, 0.0 }
  0xdb   :  { %v156_v14 = vmul.f32 0.01, %v134_v12  ;;  %v2970_v15 = vpop.f32.mrb[2].mxu0  ;;  %vm152_vm5 = vcmp.gt.f32.partialorder %v134_v12, 0.0 }
  0xdc   :  { %v149_v16 = vadd.f32 %v2970_v15, %v2834_v8  ;;  %v143_v17 = vpop.f32.mrb[3].mxu0  ;;  %v161_v18 = vsel %vm153_vm3, %v139_v10, %v157_v13  ;;  %v3591_v10 = vpack.c.bf16 %v415_v9, %v414_v6 }
  0xdd   :  { %v144_v19 = vadd.f32 %v2834_v8, %v143_v17  ;;  %2972 = vmatpush3.xpose.msk.msra.mxu1 %vm164_vm4, %v161_v18  ;;  %v160_v24 = vsel %vm152_vm5, %v134_v12, %v156_v14  ;;  %v3585_v8 = vpack.c.bf16 %v413_v4, %v412_v3 }
  0xde   :  { %vm155_vm6 = vcmp.gt.f32.partialorder %v149_v16, 0.0  ;;  %v159_v20 = vmul.f32 0.01, %v149_v16  ;;  %2976 = vmatprep.subr.mxu1 %v3411_v5 }
  0xdf   :  { %v158_v23 = vmul.f32 0.01, %v144_v19  ;;  %vm154_vm7 = vcmp.gt.f32.partialorder %v144_v19, 0.0 }
  0xe0   :  { %v163_v25 = vsel %vm155_vm6, %v149_v16, %v159_v20  ;;  %2974 = vmatmul.mubr.msk.f32.vlgmr.msra.gmra.mrb[0].mxu1 %vm164_vm4, %v160_v24 }
  0xe1   :  { %2977 = vmatpush3.xpose.msk.msra.mxu1 %vm164_vm4, %v163_v25  ;;  %2978 = vmatprep.mubr.msk.f32.mxu1 %vm3412_vm2, %v3411_v5  ;;  %v162_v29 = vsel %vm154_vm7, %v144_v19, %v158_v23 }
  0xe2   :  { %3162 = vmatprep.subr.bf16.mxu1 %v3413_v7 }
  0xe4   :  { %2979 = vmatmul.mubr.msk.f32.vlgmr.msra.gmra.mrb[2].mxu1 %vm164_vm4, %v162_v29 }
  0xe5   :  { %3164 = vmatpush3.bf16.msra.mxu1 %v3525_v26  ;;  %2994 = vmatprep.mubr.msk.f32.mxu1 %vm3412_vm2, %v3411_v5 }
  0xe6   :  { %3165 = vmatprep.subr.bf16.mxu1 %v3413_v7 }
  0xe9   :  { %3167 = vmatpush3.bf16.msra.mxu1 %v3536_v30 }
  0xea   :  { %3174 = vmatprep.subr.bf16.mxu1 %v3413_v7 }
  0xec   :  { %2995 = vmatmul.mubr.f32.vlgmr.msra.gmra.mrb[4].mxu1 %v3411_v5 }
  0xed   :  { %3176 = vmatpush3.bf16.msra.mxu1 %v3525_v26  ;;  %3016 = vmatprep.mubr.msk.f32.mxu1 %vm3412_vm2, %v3411_v5 }
  0xee   :  { %3177 = vmatprep.subr.bf16.mxu1 %v3413_v7 }
  0xf1   :  { %3179 = vmatpush3.bf16.msra.mxu1 %v3536_v30 }
  0xf2   :  { %3186 = vmatprep.subr.bf16.mxu1 %v3413_v7 }
 0x1b3   :  { %v237_v32 = vpop.f32.mrb[0].mxu1 }
 0x1b4   :  { %v2975_v33 = vpop.f32.mrb[1].mxu1  ;;  %2983 = vmatprep.mubr.msk.f32.mxu0 %vm325_vm8, %v237_v32 }
 0x1b7   :  { %v313_v34 = vpop.f32.mrb[2].mxu1 }
 0x1b8   :  { %v2980_v35 = vpop.f32.mrb[3].mxu1  ;;  %2984 = vmatmul.mubr.msk.f32.vlgmr.msra.gmra.mrb[4].mxu0 %vm325_vm8, %v313_v34 }
 0x1b9   :  { %3005 = vmatprep.mubr.msk.f32.mxu0 %vm3412_vm2, %v3411_v5  ;;  %3170 = vmatpush3.bf16.msra.mxu0 %v3585_v8 }
 0x1ba   :  { %3171 = vmatprep.subr.bf16.mxu0 %v3413_v7 }
 0x1bd   :  { %3173 = vmatpush3.bf16.msra.mxu0 %v3591_v10 }
 0x1be   :  { %3180 = vmatprep.subr.bf16.mxu0 %v3413_v7 }
 0x1bf   :  { %v490_v37 = vpop.f32.mrb[4].mxu1 }
 0x1c0   :  { %v2996_v38 = vpop.f32.mrb[5].mxu1  ;;  %v520_v39 = vadd.f32 %v3558_v36, %v490_v37  ;;  %v495_v43 = vrot.slane %v490_v37, 1 }
 0x1c2   :  { %523 = vrot.lane.b32.xlu1 %v520_v39, %s3414_s22  ;;  %v522_v40 = vrot.slane %v520_v39, 1 }
 0x1c4   :  { %525 = vrot.lane.b32.xlu0 %v522_v40, %s3414_s22 }
 0x234   :  { %v524_v60 = vpop.permute.xlu1 %523 }
 0x236   :  { %v526_v57 = vpop.permute.xlu0 %525 }
 0x28b   :  { %v2985_v42 = vpop.f32.mrb[4].mxu0 }
 0x28c   :  { %v3566_v44 = vadd.f32 %v2985_v42, %v2844_v41  ;;  %v398_v45 = vpop.f32.mrb[5].mxu0 }
 0x28d   :  { %v3568_v46 = vadd.f32 %v2844_v41, %v398_v45 }
 0x28e   :  { %v499_v47 = vadd.f32 %v495_v43, %v3566_v44 }
 0x28f   :  { %v498_v48 = vadd.f32 %v490_v37, %v3568_v46 }
 0x290   :  { %v501_v49 = vsub.f32 0.0, %v499_v47 }
 0x291   :  { %v500_v50 = vsub.f32 0.0, %v498_v48 }
 0x292   :  { %v504_v51 = vmul.f32 1.442695, %v501_v49 }
 0x293   :  { %v502_v52 = vmul.f32 1.442695, %v500_v50 }
 0x294   :  { %3264 = vpow2.f32 %v504_v51 }
 0x295   :  { %3266 = vpow2.f32 %v502_v52 }
 0x29e   :  { %v3265_v53 = vpop.eup %3264 }
 0x29f   :  { %v3267_v54 = vpop.eup %3266  ;;  %v507_v55 = vadd.f32 1.0, %v3265_v53 }
 0x2a0   :  { %v506_v56 = vadd.f32 1.0, %v3267_v54 }
 0x2a1   :  { %3268 = vrcp.f32 %v507_v55 }
 0x2a2   :  { %3270 = vrcp.f32 %v506_v56 }
 0x2ab   :  { %v3269_v58 = vpop.eup %3268 }
 0x2ac   :  { %v3271_v59 = vpop.eup %3270  ;;  %v530_v61 = vmul.f32 %v3269_v58, %v526_v57  ;;  %v544_v13 = vsub.f32 1.0, %v3269_v58  ;;  %v556_v16 = vmul.f32 0.0, %v3269_v58 }
 0x2ad   :  { %v529_v62 = vmul.f32 %v3271_v59, %v524_v60  ;;  %v543_v15 = vsub.f32 1.0, %v3271_v59  ;;  %v555_v19 = vmul.f32 0.0, %v3271_v59  ;;  %v3636_v60 = vld [vmem:[%s4239_s9] ss:$0 sm:$0xff] }
 0x2ae   :  { %535 = vrot.lane.b32.xlu1 %v530_v61, %s3414_s22 }
 0x2af   :  { %533 = vrot.lane.b32.xlu0 %v529_v62, %s3414_s22 }
 0x320   :  { %v536_v63 = vpop.permute.xlu1 %535 }
 0x321   :  { %v540_v0 = vadd.f32 %v536_v63, %v3566_v44  ;;  %v534_v1 = vpop.permute.xlu0 %533 }
 0x322   :  { %v539_v2 = vadd.f32 %v534_v1, %v3568_v46 }
 0x323   :  { %3272 = vtanh.f32 %v540_v0 }
 0x324   :  { %3274 = vtanh.f32 %v539_v2 }
 0x32d   :  { %v3273_v11 = vpop.eup %3272 }
 0x32e   :  { %v3275_v12 = vpop.eup %3274  ;;  %549 = vrot.lane.b32.xlu1 %v3273_v11, %s3415_s30 }
 0x32f   :  { %547 = vrot.lane.b32.xlu0 %v3275_v12, %s3415_s30 }
 0x3a0   :  { %v550_v14 = vpop.permute.xlu1 %549 }
 0x3a1   :  { %v554_v17 = vmul.f32 %v550_v14, %v544_v13  ;;  %v548_v18 = vpop.permute.xlu0 %547 }
 0x3a2   :  { %v553_v20 = vmul.f32 %v548_v18, %v543_v15 }
 0x3a3   :  { %v3598_v21 = vadd.f32 %v556_v16, %v554_v17 }
 0x3a4   :  { %v3600_v22 = vadd.f32 %v555_v19, %v553_v20 }
 0x3a5   :  { %v567_v23 = vrot.slane %v3598_v21, 7 }
 0x3a6   :  { %v819_v2 = vrot.slane %v3600_v22, 7 }
 0x3a7   :  { %v569_v24 = vsel %vm568_vm9, %v567_v23, %v3600_v22 }
 0x3a8   :  { %570 = vrot.lane.b32.xlu1 %v569_v24, %s3415_s30 }
 0x41a   :  { %v571_v25 = vpop.permute.xlu1 %570 }
 0x41b   :  { %3006 = vmatmul.mubr.msk.f32.vlgmr.msra.gmra.mrb[6].mxu0 %vm164_vm4, %v571_v25  ;;  %3017 = vmatmul.mubr.msk.f32.vlgmr.msra.gmra.mrb[6].mxu1 %vm164_vm4, %v571_v25 }
 0x41c   :  { %3182 = vmatpush3.bf16.msra.mxu0 %v3585_v8  ;;  %3188 = vmatpush3.bf16.msra.mxu1 %v3525_v26 }
 0x41d   :  { %3183 = vmatprep.subr.bf16.mxu0 %v3413_v7  ;;  %3189 = vmatprep.subr.bf16.mxu1 %v3413_v7 }
 0x41e   :  { %3027 = vmatprep.mubr.msk.f32.mxu0 %vm3412_vm2, %v3411_v5  ;;  %3038 = vmatprep.mubr.msk.f32.mxu1 %vm3412_vm2, %v3411_v5 }
 0x420   :  { %3185 = vmatpush3.bf16.msra.mxu0 %v3591_v10  ;;  %3191 = vmatpush3.bf16.msra.mxu1 %v3536_v30 }
 0x421   :  { %3192 = vmatprep.subr.bf16.mxu0 %v3413_v7  ;;  %3198 = vmatprep.subr.bf16.mxu1 %v3413_v7 }
 0x4ee   :  { %v640_v27 = vpop.f32.mrb[6].mxu0  ;;  %v762_v28 = vpop.f32.mrb[6].mxu1 }
 0x4ef   :  { %v784_v29 = vadd.f32 %v762_v28, %v3558_v36  ;;  %v3007_v31 = vpop.f32.mrb[7].mxu0  ;;  %v3018_v32 = vpop.f32.mrb[7].mxu1  ;;  %v767_v34 = vrot.slane %v762_v28, 7  ;;  %v771_v35 = vadd.f32 %v762_v28, %v3566_v44  ;;  %v641_v61 = vadd.f32 %v3636_v60, %v640_v27 }
 0x4f1   :  { %789 = vrot.lane.b32.xlu1 %v784_v29, %s3414_s22  ;;  %v786_v33 = vrot.slane %v784_v29, 7  ;;  %v770_v37 = vadd.f32 %v767_v34, %v3568_v46  ;;  %v773_v38 = vsub.f32 0.0, %v771_v35 }
 0x4f3   :  { %787 = vrot.lane.b32.xlu0 %v786_v33, %s3414_s22  ;;  %v772_v39 = vsub.f32 0.0, %v770_v37  ;;  %v776_v40 = vmul.f32 1.442695, %v773_v38 }
 0x4f5   :  { %v774_v41 = vmul.f32 1.442695, %v772_v39  ;;  %3276 = vpow2.f32 %v776_v40 }
 0x4f7   :  { %3278 = vpow2.f32 %v774_v41 }
 0x4ff   :  { %v3277_v42 = vpop.eup %3276 }
 0x500   :  { %v779_v45 = vadd.f32 1.0, %v3277_v42 }
 0x501   :  { %v3279_v43 = vpop.eup %3278 }
 0x502   :  { %v778_v47 = vadd.f32 1.0, %v3279_v43  ;;  %3280 = vrcp.f32 %v779_v45 }
 0x504   :  { %3282 = vrcp.f32 %v778_v47 }
 0x50c   :  { %v3281_v48 = vpop.eup %3280 }
 0x50d   :  { %v808_v3 = vsub.f32 1.0, %v3281_v48  ;;  %v823_v13 = vmul.f32 %v3281_v48, %v567_v23 }
 0x50e   :  { %v3283_v51 = vpop.eup %3282 }
 0x50f   :  { %v807_v4 = vsub.f32 1.0, %v3283_v51  ;;  %v822_v11 = vmul.f32 %v3283_v51, %v819_v2 }
 0x563   :  { %v790_v49 = vpop.permute.xlu1 %789 }
 0x564   :  { %v794_v50 = vmul.f32 %v3281_v48, %v790_v49 }
 0x565   :  { %v788_v52 = vpop.permute.xlu0 %787 }
 0x566   :  { %v793_v53 = vmul.f32 %v3283_v51, %v788_v52  ;;  %799 = vrot.lane.b32.xlu1 %v794_v50, %s3414_s22 }
 0x568   :  { %797 = vrot.lane.b32.xlu0 %v793_v53, %s3414_s22 }
 0x5d8   :  { %v800_v54 = vpop.permute.xlu1 %799 }
 0x5d9   :  { %v804_v55 = vadd.f32 %v800_v54, %v3566_v44 }
 0x5da   :  { %v798_v56 = vpop.permute.xlu0 %797 }
 0x5db   :  { %3284 = vtanh.f32 %v804_v55  ;;  %v803_v57 = vadd.f32 %v798_v56, %v3568_v46  ;;  %v3682_v55 = vld [vmem:[%s4240_s1 + $0x8] sm:$0xff] }
 0x5dd   :  { %3286 = vtanh.f32 %v803_v57  ;;  %v664_v57 = vrot.slane %v3682_v55, 7 }
 0x5de   :  { %3288 = vtanh.f32 %v641_v61 }
 0x5e5   :  { %v3285_v58 = vpop.eup %3284 }
 0x5e6   :  { %813 = vrot.lane.b32.xlu1 %v3285_v58, %s3415_s30 }
 0x5e7   :  { %v3287_v59 = vpop.eup %3286 }
 0x5e8   :  { %811 = vrot.lane.b32.xlu0 %v3287_v59, %s3415_s30  ;;  %v3289_v62 = vpop.eup %3288  ;;  %v3688_v59 = vld [vmem:[%s4240_s1] sm:$0xff] }
 0x5e9   :  { %v3639_v63 = vmul.f32 10.0, %v3289_v62  ;;  %v665_v62 = vsel %vm568_vm9, %v664_v57, %v3688_v59 }
 0x5eb   :  { %v649_v0 = vsel %vm648_vm10, %v3639_v63, -inf }
 0x60a   :  { %650 = vmax.xlane.f32.xlu1 %v649_v0 }
 0x658   :  { %v814_v1 = vpop.permute.xlu1 %813 }
 0x659   :  { %v818_v9 = vmul.f32 %v814_v1, %v808_v3 }
 0x65a   :  { %v812_v6 = vpop.permute.xlu0 %811 }
 0x65b   :  { %v817_v12 = vmul.f32 %v812_v6, %v807_v4  ;;  %v3648_v15 = vadd.f32 %v823_v13, %v818_v9 }
 0x65d   :  { %v3646_v14 = vadd.f32 %v822_v11, %v817_v12 }
 0x65f   :  { %v828_v16 = vrot.slane %v3646_v14, 1 }
 0x661   :  { %v829_v17 = vsel %vm568_vm9, %v3648_v15, %v828_v16 }
 0x662   :  { %830 = vrot.lane.b32.xlu0 %v829_v17, %s3415_s30 }
 0x697   :  { %v651_v27 = vpop.xlane.xlu1 %650 }
 0x698   :  { %v652_v28 = vsub.f32 %v3639_v63, %v651_v27 }
 0x69a   :  { %v653_v29 = vmul.f32 1.442695, %v652_v28 }
 0x69c   :  { %3290 = vpow2.f32 %v653_v29 }
 0x6a6   :  { %v3291_v31 = vpop.eup %3290 }
 0x6a7   :  { %v655_v32 = vsel %vm648_vm10, %v3291_v31, 0.0 }
 0x6d4   :  { %v831_v18 = vpop.permute.xlu0 %830 }
 0x6d5   :  { %3028 = vmatmul.mubr.msk.f32.vlgmr.msra.gmra.mrb[8].mxu0 %vm164_vm4, %v831_v18  ;;  %3039 = vmatmul.mubr.msk.f32.vlgmr.msra.gmra.mrb[8].mxu1 %vm164_vm4, %v831_v18 }
 0x6d6   :  { %3194 = vmatpush3.bf16.msra.mxu0 %v3585_v8  ;;  %3200 = vmatpush3.bf16.msra.mxu1 %v3525_v26 }
 0x6d7   :  { %3195 = vmatprep.subr.bf16.mxu0 %v3413_v7  ;;  %3201 = vmatprep.subr.bf16.mxu1 %v3413_v7 }
 0x6d8   :  { %3049 = vmatprep.mubr.msk.f32.mxu0 %vm3412_vm2, %v3411_v5  ;;  %3060 = vmatprep.mubr.msk.f32.mxu1 %vm3412_vm2, %v3411_v5 }
 0x6da   :  { %3197 = vmatpush3.bf16.msra.mxu0 %v3591_v10  ;;  %3203 = vmatpush3.bf16.msra.mxu1 %v3536_v30 }
 0x6db   :  { %3204 = vmatprep.subr.bf16.mxu0 %v3413_v7  ;;  %3210 = vmatprep.subr.bf16.mxu1 %v3413_v7 }
 0x7a8   :  { %v3668_v19 = vpop.f32.mrb[8].mxu0  ;;  %v1019_v20 = vpop.f32.mrb[8].mxu1 }
 0x7a9   :  { %v1042_v21 = vadd.f32 %v1019_v20, %v3558_v36  ;;  %v3029_v22 = vpop.f32.mrb[9].mxu0  ;;  %v3040_v23 = vpop.f32.mrb[9].mxu1  ;;  %v1024_v33 = vrot.slane %v1019_v20, 6  ;;  %v1025_v34 = vrot.slane %v1019_v20, 7 }
 0x7ab   :  { %v1044_v24 = vrot.slane %v1042_v21, 6  ;;  %v1045_v25 = vrot.slane %v1042_v21, 7  ;;  %v1028_v35 = vadd.f32 %v1024_v33, %v3568_v46  ;;  %v1029_v37 = vadd.f32 %v1025_v34, %v3566_v44 }
 0x7ad   :  { %1046 = vrot.lane.b32.xlu0 %v1044_v24, %s3414_s22  ;;  %v1030_v38 = vsub.f32 0.0, %v1028_v35  ;;  %v1031_v39 = vsub.f32 0.0, %v1029_v37  ;;  %v1078_v24 = vrot.slane %v3646_v14, 7 }
 0x7af   :  { %v1032_v40 = vmul.f32 1.442695, %v1030_v38  ;;  %v1034_v41 = vmul.f32 1.442695, %v1031_v39 }
 0x7b1   :  { %1048 = vrot.lane.b32.xlu0 %v1045_v25, %s3414_s22  ;;  %3292 = vpow2.f32 %v1032_v40 }
 0x7b2   :  { %3294 = vpow2.f32 %v1034_v41 }
 0x7bb   :  { %v3293_v42 = vpop.eup %3292 }
 0x7bc   :  { %v1036_v43 = vadd.f32 1.0, %v3293_v42  ;;  %v3295_v45 = vpop.eup %3294 }
 0x7bd   :  { %v1037_v47 = vadd.f32 1.0, %v3295_v45 }
 0x7be   :  { %3296 = vrcp.f32 %v1036_v43  ;;  %v901_v43 = vadd.f32 %v3636_v60, %v3668_v19 }
 0x7bf   :  { %3298 = vrcp.f32 %v1037_v47 }
 0x7c8   :  { %v3297_v48 = vpop.eup %3296 }
 0x7c9   :  { %v3299_v51 = vpop.eup %3298  ;;  %v1066_v22 = vsub.f32 1.0, %v3297_v48  ;;  %v1082_v28 = vmul.f32 %v3297_v48, %v1078_v24 }
 0x7ca   :  { %v1067_v29 = vsub.f32 1.0, %v3299_v51 }
 0x7d0   :  { %656 = vadd.xlane.f32.xlu0 %v655_v32 }
 0x81f   :  { %v1047_v49 = vpop.permute.xlu0 %1046 }
 0x820   :  { %v1052_v50 = vmul.f32 %v3297_v48, %v1047_v49 }
 0x822   :  { %1056 = vrot.lane.b32.xlu1 %v1052_v50, %s3414_s22 }
 0x823   :  { %v1049_v52 = vpop.permute.xlu0 %1048 }
 0x824   :  { %v1053_v53 = vmul.f32 %v3299_v51, %v1049_v52 }
 0x826   :  { %1058 = vrot.lane.b32.xlu0 %v1053_v53, %s3414_s22 }
 0x85d   :  { %v657_v54 = vpop.xlane.xlu0 %656 }
 0x85e   :  { %3300 = vlog2.f32 %v657_v54 }
 0x868   :  { %v3301_v56 = vpop.eup %3300 }
 0x869   :  { %v659_v58 = vmul.f32 0.6931472, %v3301_v56 }
 0x86b   :  { %v660_v61 = vadd.f32 %v659_v58, %v651_v27  ;;  %v1079_v27 = vrot.slane %v3648_v15, 7 }
 0x86d   :  { %v3693_v0 = vsub.f32 %v3639_v63, %v660_v61  ;;  %v419_v63 = vlaneseq  ;;  %v1083_v33 = vmul.f32 %v3299_v51, %v1079_v27 }
 0x86f   :  { %v667_v1 = vadd.f32 %v665_v62, %v3693_v0  ;;  %v3702_v13 = vand.u32 127, %v419_v63 }
 0x871   :  { %v668_v2 = vsel %vm648_vm10, %v667_v1, -inf }
 0x872   :  { %669 = vmax.xlane.f32.xlu1 %v668_v2 }
 0x894   :  { %v1057_v3 = vpop.permute.xlu1 %1056 }
 0x895   :  { %v1062_v4 = vadd.f32 %v1057_v3, %v3568_v46 }
 0x897   :  { %3302 = vtanh.f32 %v1062_v4 }
 0x898   :  { %v1059_v6 = vpop.permute.xlu0 %1058 }
 0x899   :  { %v1063_v9 = vadd.f32 %v1059_v6, %v3566_v44 }
 0x89b   :  { %3304 = vtanh.f32 %v1063_v9 }
 0x89c   :  { %3306 = vtanh.f32 %v901_v43 }
 0x8a1   :  { %v3303_v11 = vpop.eup %3302 }
 0x8a2   :  { %1070 = vrot.lane.b32.xlu0 %v3303_v11, %s3415_s30 }
 0x8a5   :  { %v3305_v12 = vpop.eup %3304 }
 0x8a6   :  { %1072 = vrot.lane.b32.xlu0 %v3305_v12, %s3415_s30  ;;  %v3307_v51 = vpop.eup %3306 }
 0x8a7   :  { %v905_v19 = vmul.f32 10.0, %v3307_v51 }
 0x8ff   :  { %v670_v16 = vpop.xlane.xlu1 %669 }
 0x900   :  { %vm671_vm11 = vcmp.eq.f32.partialorder %v667_v1, %v670_v16 }
 0x901   :  { %v672_v17 = vsel %vm671_vm11, %v3702_v13, 8 }
 0x902   :  { %v673_v18 = vsel %vm648_vm10, %v672_v17, 2147483647 }
 0x903   :  { %v675_v20 = vshra.s32 %v673_v18, 16  ;;  %v674_v14 = vand.u32 65535, %v673_v18 }
 0x905   :  { %v677_v21 = vcvt.s32.f32 %v675_v20  ;;  %v676_v41 = vcvt.s32.f32 %v674_v14 }
 0x907   :  { %678 = vmin.xlane.f32.xlu0 %v677_v21 }
 0x914   :  { %v1071_v23 = vpop.permute.xlu0 %1070 }
 0x915   :  { %v1076_v25 = vmul.f32 %v1071_v23, %v1066_v22 }
 0x917   :  { %v3708_v32 = vadd.f32 %v1082_v28, %v1076_v25 }
 0x918   :  { %v1073_v31 = vpop.permute.xlu0 %1072 }
 0x919   :  { %v1077_v34 = vmul.f32 %v1073_v31, %v1067_v29  ;;  %v1088_v37 = vrot.slane %v3708_v32, 2 }
 0x91b   :  { %v3710_v35 = vadd.f32 %v1083_v33, %v1077_v34 }
 0x91d   :  { %v1089_v38 = vrot.slane %v3710_v35, 1 }
 0x91f   :  { %v1090_v39 = vsel %vm568_vm9, %v1089_v38, %v1088_v37 }
 0x920   :  { %1091 = vrot.lane.b32.xlu1 %v1090_v39, %s3415_s30 }
 0x992   :  { %v1092_v40 = vpop.permute.xlu1 %1091 }
 0x993   :  { %3050 = vmatmul.mubr.msk.f32.vlgmr.msra.gmra.mrb[10].mxu0 %vm164_vm4, %v1092_v40  ;;  %3061 = vmatmul.mubr.msk.f32.vlgmr.msra.gmra.mrb[10].mxu1 %vm164_vm4, %v1092_v40 }
 0x994   :  { %v679_v15 = vpop.xlane.xlu0 %678  ;;  %3206 = vmatpush3.bf16.msra.mxu0 %v3585_v8  ;;  %3212 = vmatpush3.bf16.msra.mxu1 %v3525_v26 }
 0x995   :  { %vm680_vm12 = vcmp.eq.f32.partialorder %v677_v21, %v679_v15  ;;  %3207 = vmatprep.subr.bf16.mxu0 %v3413_v7  ;;  %3213 = vmatprep.subr.bf16.mxu1 %v3413_v7  ;;  %v685_v45 = vcvt.f32.s32 %v679_v15  ;;  %v921_v15 = vrot.slane %v3688_v59, 1 }
 0x996   :  { %v681_v42 = vsel %vm680_vm12, %v676_v41, inf  ;;  %3071 = vmatprep.mubr.msk.f32.mxu0 %vm3412_vm2, %v3411_v5  ;;  %3082 = vmatprep.mubr.msk.f32.mxu1 %vm3412_vm2, %v3411_v5  ;;  %vm2800_vm12 = vcmask 7168  }
 0x997   :  { %682 = vmin.xlane.f32.xlu0 %v681_v42  ;;  %v686_v48 = vshll.u32 %v685_v45, 16  ;;  %v922_v43 = vsel %vm568_vm9, %v3682_v55, %v921_v15 }
 0x998   :  { %3209 = vmatpush3.bf16.msra.mxu0 %v3591_v10  ;;  %3215 = vmatpush3.bf16.msra.mxu1 %v3536_v30 }
 0x999   :  { %3216 = vmatprep.subr.bf16.mxu0 %v3413_v7  ;;  %3222 = vmatprep.subr.bf16.mxu1 %v3413_v7 }
 0xa24   :  { %v683_v47 = vpop.xlane.xlu0 %682 }
 0xa25   :  { %v684_v49 = vcvt.f32.s32 %v683_v47 }
 0xa27   :  { %v3732_v50 = vadd.s32 %v686_v48, %v684_v49 }
 0xa29   :  { %vm688_vm13 = vcmp.eq.s32.totalorder %v3702_v13, %v3732_v50 }
 0xa2a   :  { %v3740_v52 = vsel %vm688_vm13, 1.0, %v3411_v5 }
 0xa2b   :  { %v695_v53 = vmax.f32 %v3740_v52, 0.0 }
 0xa2d   :  { %vm906_vm14 = vcmp.gt.f32.partialorder %v695_v53, 0.0 }
 0xa2e   :  { %v907_v54 = vsel %vm906_vm14, -inf, %v905_v19  ;;  %vm2802_vm14 = vcmask 15360  }
 0xa2f   :  { %v908_v56 = vsel %vm648_vm10, %v907_v54, -inf }
 0xa30   :  { %909 = vmax.xlane.f32.xlu1 %v908_v56 }
 0xa66   :  { %v3746_v57 = vpop.f32.mrb[10].mxu0  ;;  %v1281_v58 = vpop.f32.mrb[10].mxu1 }
 0xa67   :  { %v3051_v61 = vpop.f32.mrb[11].mxu0  ;;  %v3062_v62 = vpop.f32.mrb[11].mxu1  ;;  %v1304_v9 = vadd.f32 %v1281_v58, %v3558_v36  ;;  %v1286_v16 = vrot.slane %v1281_v58, 5  ;;  %v1287_v17 = vrot.slane %v1281_v58, 6 }
 0xa69   :  { %v1306_v11 = vrot.slane %v1304_v9, 5  ;;  %v1307_v12 = vrot.slane %v1304_v9, 6  ;;  %v1290_v18 = vadd.f32 %v1286_v16, %v3568_v46  ;;  %v1291_v20 = vadd.f32 %v1287_v17, %v3566_v44 }
 0xa6a   :  { %v1340_v9 = vrot.slane %v3708_v32, 7 }
 0xa6b   :  { %v1292_v21 = vsub.f32 0.0, %v1290_v18  ;;  %v1293_v22 = vsub.f32 0.0, %v1291_v20 }
 0xa6d   :  { %v1294_v23 = vmul.f32 1.442695, %v1292_v21  ;;  %v1296_v24 = vmul.f32 1.442695, %v1293_v22 }
 0xabd   :  { %v910_v1 = vpop.xlane.xlu1 %909 }
 0xabe   :  { %v911_v2 = vsub.f32 %v907_v54, %v910_v1 }
 0xac0   :  { %v912_v3 = vmul.f32 1.442695, %v911_v2 }
 0xac2   :  { %3308 = vpow2.f32 %v912_v3 }
 0xac3   :  { %3310 = vpow2.f32 %v1294_v23 }
 0xac4   :  { %3312 = vpow2.f32 %v1296_v24 }
 0xacc   :  { %v3309_v4 = vpop.eup %3308 }
 0xacd   :  { %v914_v6 = vsel %vm648_vm10, %v3309_v4, 0.0  ;;  %v3311_v25 = vpop.eup %3310 }
 0xace   :  { %915 = vadd.xlane.f32.xlu0 %v914_v6  ;;  %v1298_v27 = vadd.f32 1.0, %v3311_v25  ;;  %v3313_v28 = vpop.eup %3312 }
 0xacf   :  { %v1299_v29 = vadd.f32 1.0, %v3313_v28 }
 0xad0   :  { %3314 = vrcp.f32 %v1298_v27 }
 0xad1   :  { %3316 = vrcp.f32 %v1299_v29 }
 0xada   :  { %v3315_v33 = vpop.eup %3314 }
 0xadb   :  { %v3317_v38 = vpop.eup %3316  ;;  %v1328_v4 = vsub.f32 1.0, %v3315_v33  ;;  %v1344_v16 = vmul.f32 %v3315_v33, %v1340_v9 }
 0xadc   :  { %v1329_v17 = vsub.f32 1.0, %v3317_v38 }
 0xae4   :  { %1308 = vrot.lane.b32.xlu0 %v1306_v11, %s3414_s22 }
 0xae8   :  { %1310 = vrot.lane.b32.xlu0 %v1307_v12, %s3414_s22  ;;  %v1341_v12 = vrot.slane %v3710_v35, 7 }
 0xaea   :  { %v1345_v21 = vmul.f32 %v3317_v38, %v1341_v12 }
 0xb5b   :  { %v916_v31 = vpop.xlane.xlu0 %915 }
 0xb5c   :  { %3318 = vlog2.f32 %v916_v31 }
 0xb5f   :  { %v1309_v34 = vpop.permute.xlu0 %1308 }
 0xb60   :  { %v1314_v37 = vmul.f32 %v3315_v33, %v1309_v34  ;;  %v1162_v33 = vadd.f32 %v3636_v60, %v3746_v57 }
 0xb62   :  { %1318 = vrot.lane.b32.xlu1 %v1314_v37, %s3414_s22 }
 0xb63   :  { %v1311_v39 = vpop.permute.xlu0 %1310 }
 0xb64   :  { %v1315_v14 = vmul.f32 %v3317_v38, %v1311_v39 }
 0xb66   :  { %v3319_v40 = vpop.eup %3318  ;;  %1320 = vrot.lane.b32.xlu1 %v1315_v14, %s3414_s22 }
 0xb67   :  { %v918_v41 = vmul.f32 0.6931472, %v3319_v40 }
 0xb69   :  { %v919_v42 = vadd.f32 %v918_v41, %v910_v1 }
 0xb6b   :  { %v3759_v45 = vsub.f32 %v907_v54, %v919_v42 }
 0xb6d   :  { %v924_v47 = vadd.f32 %v922_v43, %v3759_v45 }
 0xb6f   :  { %v925_v48 = vsel %vm648_vm10, %v924_v47, -inf }
 0xb70   :  { %926 = vmax.xlane.f32.xlu0 %v925_v48 }
 0xbd4   :  { %v1319_v49 = vpop.permute.xlu1 %1318 }
 0xbd5   :  { %v1324_v51 = vadd.f32 %v1319_v49, %v3568_v46 }
 0xbd7   :  { %3320 = vtanh.f32 %v1324_v51 }
 0xbd8   :  { %v1321_v19 = vpop.permute.xlu1 %1320 }
 0xbd9   :  { %v1325_v56 = vadd.f32 %v1321_v19, %v3566_v44 }
 0xbdb   :  { %3322 = vtanh.f32 %v1325_v56 }
 0xbdc   :  { %3324 = vtanh.f32 %v1162_v33 }
 0xbe1   :  { %v3321_v58 = vpop.eup %3320 }
 0xbe2   :  { %1332 = vrot.lane.b32.xlu0 %v3321_v58, %s3415_s30 }
 0xbe5   :  { %v3323_v61 = vpop.eup %3322 }
 0xbe6   :  { %1334 = vrot.lane.b32.xlu0 %v3323_v61, %s3415_s30  ;;  %v3325_v40 = vpop.eup %3324 }
 0xbe7   :  { %v1166_v57 = vmul.f32 10.0, %v3325_v40 }
 0xbfd   :  { %v927_v54 = vpop.xlane.xlu0 %926 }
 0xbfe   :  { %vm928_vm15 = vcmp.eq.f32.partialorder %v924_v47, %v927_v54 }
 0xbff   :  { %v929_v62 = vsel %vm928_vm15, %v3702_v13, 8 }
 0xc00   :  { %v930_v1 = vsel %vm648_vm10, %v929_v62, 2147483647  ;;  %v1182_v62 = vrot.slane %v3688_v59, 2 }
 0xc01   :  { %v932_v2 = vshra.s32 %v930_v1, 16  ;;  %v931_v32 = vand.u32 65535, %v930_v1  ;;  %v1183_v1 = vrot.slane %v3682_v55, 1 }
 0xc03   :  { %v934_v3 = vcvt.s32.f32 %v932_v2  ;;  %v933_v35 = vcvt.s32.f32 %v931_v32 }
 0xc05   :  { %935 = vmin.xlane.f32.xlu1 %v934_v3 }
 0xc54   :  { %v1333_v6 = vpop.permute.xlu0 %1332 }
 0xc55   :  { %v1338_v11 = vmul.f32 %v1333_v6, %v1328_v4  ;;  %v1184_v4 = vsel %vm568_vm9, %v1183_v1, %v1182_v62 }
 0xc57   :  { %v3771_v20 = vadd.f32 %v1344_v16, %v1338_v11 }
 0xc58   :  { %v1335_v18 = vpop.permute.xlu0 %1334 }
 0xc59   :  { %v1339_v22 = vmul.f32 %v1335_v18, %v1329_v17  ;;  %v1350_v24 = vrot.slane %v3771_v20, 3 }
 0xc5b   :  { %v3773_v23 = vadd.f32 %v1345_v21, %v1339_v22 }
 0xc5d   :  { %v1351_v25 = vrot.slane %v3773_v23, 2 }
 0xc5f   :  { %v1352_v27 = vsel %vm568_vm9, %v1351_v25, %v1350_v24 }
 0xc60   :  { %1353 = vrot.lane.b32.xlu0 %v1352_v27, %s3415_s30 }
 0xc92   :  { %v936_v28 = vpop.xlane.xlu1 %935 }
 0xc93   :  { %vm937_vm3 = vcmp.eq.f32.partialorder %v934_v3, %v936_v28  ;;  %v942_v34 = vcvt.f32.s32 %v936_v28 }
 0xc94   :  { %v938_v29 = vsel %vm937_vm3, %v933_v35, inf }
 0xc95   :  { %939 = vmin.xlane.f32.xlu0 %v938_v29  ;;  %v943_v38 = vshll.u32 %v942_v34, 16 }
 0xcd2   :  { %v1354_v31 = vpop.permute.xlu0 %1353 }
 0xcd3   :  { %3072 = vmatmul.mubr.msk.f32.vlgmr.msra.gmra.mrb[12].mxu0 %vm164_vm4, %v1354_v31  ;;  %3083 = vmatmul.mubr.msk.f32.vlgmr.msra.gmra.mrb[12].mxu1 %vm164_vm4, %v1354_v31 }
 0xcd4   :  { %3218 = vmatpush3.bf16.msra.mxu0 %v3585_v8  ;;  %3224 = vmatpush3.bf16.msra.mxu1 %v3525_v26 }
 0xcd5   :  { %3219 = vmatprep.subr.bf16.mxu0 %v3413_v7  ;;  %3225 = vmatprep.subr.bf16.mxu1 %v3413_v7 }
 0xcd6   :  { %3093 = vmatprep.mubr.msk.f32.mxu0 %vm3412_vm2, %v3411_v5  ;;  %3104 = vmatprep.mubr.msk.f32.mxu1 %vm3412_vm2, %v3411_v5 }
 0xcd8   :  { %3221 = vmatpush3.bf16.msra.mxu0 %v3591_v10  ;;  %3227 = vmatpush3.bf16.msra.mxu1 %v3536_v30 }
 0xcd9   :  { %3228 = vmatprep.subr.bf16.mxu0 %v3413_v7  ;;  %3234 = vmatprep.subr.bf16.mxu1 %v3413_v7 }
 0xd22   :  { %v940_v37 = vpop.xlane.xlu0 %939 }
 0xd23   :  { %v941_v39 = vcvt.f32.s32 %v940_v37 }
 0xd25   :  { %v3795_v14 = vadd.s32 %v943_v38, %v941_v39 }
 0xd27   :  { %vm945_vm5 = vcmp.eq.s32.totalorder %v3702_v13, %v3795_v14 }
 0xd28   :  { %v2853_v15 = vsel %vm945_vm5, 1.0, %v3411_v5 }
 0xd29   :  { %v3805_v41 = vmax.f32 %v695_v53, %v2853_v15 }
 0xd2b   :  { %vm1167_vm6 = vcmp.gt.f32.partialorder %v3805_v41, 0.0 }
 0xd2c   :  { %v1168_v42 = vsel %vm1167_vm6, -inf, %v1166_v57 }
 0xd2d   :  { %v1169_v43 = vsel %vm648_vm10, %v1168_v42, -inf }
 0xd2e   :  { %1170 = vmax.xlane.f32.xlu1 %v1169_v43 }
 0xda6   :  { %v3809_v47 = vpop.f32.mrb[12].mxu0  ;;  %v1543_v48 = vpop.f32.mrb[12].mxu1 }
 0xda7   :  { %v3073_v49 = vpop.f32.mrb[13].mxu0  ;;  %v3084_v51 = vpop.f32.mrb[13].mxu1  ;;  %v1566_v12 = vadd.f32 %v1543_v48, %v3558_v36  ;;  %v1548_v18 = vrot.slane %v1543_v48, 4  ;;  %v1549_v21 = vrot.slane %v1543_v48, 5 }
 0xda9   :  { %v1568_v16 = vrot.slane %v1566_v12, 4  ;;  %v1569_v17 = vrot.slane %v1566_v12, 5  ;;  %v1552_v22 = vadd.f32 %v1548_v18, %v3568_v46  ;;  %v1553_v24 = vadd.f32 %v1549_v21, %v3566_v44 }
 0xdab   :  { %v1554_v25 = vsub.f32 0.0, %v1552_v22  ;;  %v1555_v27 = vsub.f32 0.0, %v1553_v24 }
 0xdad   :  { %v1556_v32 = vmul.f32 1.442695, %v1554_v25  ;;  %v1558_v28 = vmul.f32 1.442695, %v1555_v27 }
 0xdbb   :  { %v1171_v19 = vpop.xlane.xlu1 %1170 }
 0xdbc   :  { %v1172_v56 = vsub.f32 %v1168_v42, %v1171_v19 }
 0xdbe   :  { %v1173_v58 = vmul.f32 1.442695, %v1172_v56 }
 0xdc0   :  { %3326 = vpow2.f32 %v1173_v58 }
 0xdca   :  { %v3327_v61 = vpop.eup %3326 }
 0xdcb   :  { %v1175_v52 = vsel %vm648_vm10, %v3327_v61, 0.0 }
 0xdcc   :  { %1176 = vadd.xlane.f32.xlu1 %v1175_v52 }
 0xe59   :  { %v1177_v53 = vpop.xlane.xlu1 %1176 }
 0xe5a   :  { %3328 = vlog2.f32 %v1177_v53 }
 0xe5b   :  { %3330 = vpow2.f32 %v1556_v32 }
 0xe5c   :  { %3332 = vpow2.f32 %v1558_v28 }
 0xe64   :  { %v3329_v54 = vpop.eup %3328 }
 0xe65   :  { %v1179_v2 = vmul.f32 0.6931472, %v3329_v54  ;;  %v3331_v35 = vpop.eup %3330 }
 0xe66   :  { %v1560_v29 = vadd.f32 1.0, %v3331_v35  ;;  %v3333_v31 = vpop.eup %3332 }
 0xe67   :  { %v1180_v3 = vadd.f32 %v1179_v2, %v1171_v19  ;;  %v1561_v33 = vadd.f32 1.0, %v3333_v31 }
 0xe68   :  { %3334 = vrcp.f32 %v1560_v29 }
 0xe69   :  { %v3815_v6 = vsub.f32 %v1168_v42, %v1180_v3  ;;  %3336 = vrcp.f32 %v1561_v33  ;;  %v2801_v33 = vsel %vm2800_vm12, %v3732_v50, %v3795_v14 }
 0xe6b   :  { %v1186_v9 = vadd.f32 %v1184_v4, %v3815_v6  ;;  %v1602_v4 = vrot.slane %v3771_v20, 7  ;;  %v1424_v20 = vadd.f32 %v3636_v60, %v3809_v47 }
 0xe6d   :  { %v1187_v11 = vsel %vm648_vm10, %v1186_v9, -inf }
 0xe6e   :  { %1188 = vmax.xlane.f32.xlu1 %v1187_v11  ;;  %v1603_v11 = vrot.slane %v3773_v23, 7 }
 0xe72   :  { %v3335_v37 = vpop.eup %3334 }
 0xe73   :  { %v3337_v40 = vpop.eup %3336  ;;  %v1590_v2 = vsub.f32 1.0, %v3335_v37  ;;  %v1606_v12 = vmul.f32 %v3335_v37, %v1602_v4 }
 0xe74   :  { %v1607_v21 = vmul.f32 %v3337_v40, %v1603_v11 }
 0xe7f   :  { %1570 = vrot.lane.b32.xlu1 %v1568_v16, %s3414_s22  ;;  %v1591_v16 = vsub.f32 1.0, %v3337_v40 }
 0xe83   :  { %1572 = vrot.lane.b32.xlu1 %v1569_v17, %s3414_s22 }
 0xefb   :  { %v1189_v34 = vpop.xlane.xlu1 %1188 }
 0xefc   :  { %vm1190_vm7 = vcmp.eq.f32.partialorder %v1186_v9, %v1189_v34 }
 0xefd   :  { %v1191_v42 = vsel %vm1190_vm7, %v3702_v13, 8 }
 0xefe   :  { %v1192_v43 = vsel %vm648_vm10, %v1191_v42, 2147483647 }
 0xeff   :  { %v1571_v38 = vpop.permute.xlu1 %1570  ;;  %v1194_v48 = vshra.s32 %v1192_v43, 16  ;;  %v1193_v53 = vand.u32 65535, %v1192_v43 }
 0xf00   :  { %v1576_v39 = vmul.f32 %v3335_v37, %v1571_v38 }
 0xf01   :  { %v1196_v49 = vcvt.s32.f32 %v1194_v48  ;;  %v1195_v62 = vcvt.s32.f32 %v1193_v53  ;;  %v1444_v53 = vrot.slane %v3688_v59, 3 }
 0xf02   :  { %1580 = vrot.lane.b32.xlu0 %v1576_v39, %s3414_s22 }
 0xf03   :  { %v1573_v15 = vpop.permute.xlu1 %1572 }
 0xf04   :  { %v1577_v57 = vmul.f32 %v3337_v40, %v1573_v15 }
 0xf06   :  { %1582 = vrot.lane.b32.xlu1 %v1577_v57, %s3414_s22 }
 0xf2a   :  { %1197 = vmin.xlane.f32.xlu1 %v1196_v49 }
 0xf74   :  { %v1581_v51 = vpop.permute.xlu0 %1580 }
 0xf75   :  { %v1586_v19 = vadd.f32 %v1581_v51, %v3568_v46 }
 0xf77   :  { %3338 = vtanh.f32 %v1586_v19 }
 0xf78   :  { %v1583_v56 = vpop.permute.xlu1 %1582 }
 0xf79   :  { %v1587_v58 = vadd.f32 %v1583_v56, %v3566_v44 }
 0xf7b   :  { %3340 = vtanh.f32 %v1587_v58 }
 0xf7c   :  { %3342 = vtanh.f32 %v1424_v20 }
 0xf81   :  { %v3339_v61 = vpop.eup %3338 }
 0xf82   :  { %1594 = vrot.lane.b32.xlu0 %v3339_v61, %s3415_s30 }
 0xf85   :  { %v3341_v52 = vpop.eup %3340 }
 0xf86   :  { %1596 = vrot.lane.b32.xlu0 %v3341_v52, %s3415_s30  ;;  %v3343_v34 = vpop.eup %3342 }
 0xf87   :  { %v1428_v39 = vmul.f32 10.0, %v3343_v34 }
 0xfb7   :  { %v1198_v54 = vpop.xlane.xlu1 %1197 }
 0xfb8   :  { %vm1199_vm11 = vcmp.eq.f32.partialorder %v1196_v49, %v1198_v54  ;;  %v1204_v23 = vcvt.f32.s32 %v1198_v54  ;;  %v1445_v54 = vrot.slane %v3682_v55, 2 }
 0xfb9   :  { %v1200_v1 = vsel %vm1199_vm11, %v1195_v62, inf  ;;  %vm4247_vm11 = vcmask 23552  }
 0xfba   :  { %1201 = vmin.xlane.f32.xlu0 %v1200_v1  ;;  %v1205_v35 = vshll.u32 %v1204_v23, 16 }
 0xff4   :  { %v1595_v3 = vpop.permute.xlu0 %1594 }
 0xff5   :  { %v1600_v9 = vmul.f32 %v1595_v3, %v1590_v2  ;;  %v1446_v2 = vsel %vm568_vm9, %v1445_v54, %v1444_v53 }
 0xff7   :  { %v3834_v18 = vadd.f32 %v1606_v12, %v1600_v9 }
 0xff8   :  { %v1597_v17 = vpop.permute.xlu0 %1596 }
 0xff9   :  { %v1601_v22 = vmul.f32 %v1597_v17, %v1591_v16  ;;  %v1612_v25 = vrot.slane %v3834_v18, 4 }
 0xffb   :  { %v3836_v24 = vadd.f32 %v1607_v21, %v1601_v22 }
 0xffd   :  { %v1613_v27 = vrot.slane %v3836_v24, 3 }
 0xfff   :  { %v1614_v32 = vsel %vm568_vm9, %v1613_v27, %v1612_v25 }
0x1000   :  { %1615 = vrot.lane.b32.xlu1 %v1614_v32, %s3415_s30 }
0x1047   :  { %v1202_v28 = vpop.xlane.xlu0 %1201 }
0x1048   :  { %v1203_v29 = vcvt.f32.s32 %v1202_v28 }
0x104a   :  { %v3844_v31 = vadd.s32 %v1205_v35, %v1203_v29 }
0x104c   :  { %vm1207_vm15 = vcmp.eq.s32.totalorder %v3702_v13, %v3844_v31  ;;  %v3853_v47 = vsel %vm2802_vm14, %v2801_v33, %v3844_v31 }
0x104d   :  { %v2856_v37 = vsel %vm1207_vm15, 1.0, %v3411_v5 }
0x104e   :  { %v3860_v38 = vmax.f32 %v3805_v41, %v2856_v37 }
0x1050   :  { %vm1429_vm3 = vcmp.gt.f32.partialorder %v3860_v38, 0.0 }
0x1051   :  { %v1430_v40 = vsel %vm1429_vm3, -inf, %v1428_v39 }
0x1052   :  { %v1431_v15 = vsel %vm648_vm10, %v1430_v40, -inf }
0x1053   :  { %1432 = vmax.xlane.f32.xlu1 %v1431_v15 }
0x1072   :  { %v1616_v57 = vpop.permute.xlu1 %1615 }
0x1073   :  { %3094 = vmatmul.mubr.msk.f32.vlgmr.msra.gmra.mrb[14].mxu0 %vm164_vm4, %v1616_v57  ;;  %3105 = vmatmul.mubr.msk.f32.vlgmr.msra.gmra.mrb[14].mxu1 %vm164_vm4, %v1616_v57 }
0x1074   :  { %3230 = vmatpush3.bf16.msra.mxu0 %v3585_v8  ;;  %3236 = vmatpush3.bf16.msra.mxu1 %v3525_v26 }
0x1075   :  { %3231 = vmatprep.subr.bf16.mxu0 %v3413_v7  ;;  %3237 = vmatprep.subr.bf16.mxu1 %v3413_v7 }
0x1076   :  { %3115 = vmatprep.mubr.msk.f32.mxu0 %vm3412_vm2, %v3411_v5  ;;  %3126 = vmatprep.mubr.msk.f32.mxu1 %vm3412_vm2, %v3411_v5 }
0x1078   :  { %3233 = vmatpush3.bf16.msra.mxu0 %v3591_v10  ;;  %3239 = vmatpush3.bf16.msra.mxu1 %v3536_v30 }
0x1079   :  { %3240 = vmatprep.subr.bf16.mxu0 %v3413_v7  ;;  %3246 = vmatprep.subr.bf16.mxu1 %v3413_v7 }
0x10e0   :  { %v1433_v41 = vpop.xlane.xlu1 %1432 }
0x10e1   :  { %v1434_v42 = vsub.f32 %v1430_v40, %v1433_v41 }
0x10e3   :  { %v1435_v43 = vmul.f32 1.442695, %v1434_v42 }
0x10e5   :  { %3344 = vpow2.f32 %v1435_v43 }
0x10ef   :  { %v3345_v48 = vpop.eup %3344 }
0x10f0   :  { %v1437_v49 = vsel %vm648_vm10, %v3345_v48, 0.0 }
0x10f1   :  { %1438 = vadd.xlane.f32.xlu0 %v1437_v49 }
0x1146   :  { %v3879_v51 = vpop.f32.mrb[14].mxu0  ;;  %v1805_v19 = vpop.f32.mrb[14].mxu1 }
0x1147   :  { %v3095_v56 = vpop.f32.mrb[15].mxu0  ;;  %v3106_v58 = vpop.f32.mrb[15].mxu1  ;;  %v1828_v11 = vadd.f32 %v1805_v19, %v3558_v36  ;;  %v1810_v17 = vrot.slane %v1805_v19, 3  ;;  %v1811_v21 = vrot.slane %v1805_v19, 4 }
0x1149   :  { %v1830_v12 = vrot.slane %v1828_v11, 3  ;;  %v1831_v16 = vrot.slane %v1828_v11, 4  ;;  %v1814_v22 = vadd.f32 %v1810_v17, %v3568_v46  ;;  %v1815_v25 = vadd.f32 %v1811_v21, %v3566_v44 }
0x114a   :  { %v1864_v11 = vrot.slane %v3834_v18, 7  ;;  %v1686_v18 = vadd.f32 %v3636_v60, %v3879_v51 }
0x114b   :  { %v1816_v27 = vsub.f32 0.0, %v1814_v22  ;;  %v1817_v32 = vsub.f32 0.0, %v1815_v25 }
0x114d   :  { %v1818_v20 = vmul.f32 1.442695, %v1816_v27  ;;  %v1820_v23 = vmul.f32 1.442695, %v1817_v32 }
0x117e   :  { %v1439_v61 = vpop.xlane.xlu0 %1438 }
0x117f   :  { %3346 = vlog2.f32 %v1439_v61 }
0x1180   :  { %3348 = vpow2.f32 %v1818_v20 }
0x1181   :  { %3350 = vpow2.f32 %v1820_v23 }
0x1189   :  { %v3347_v52 = vpop.eup %3346 }
0x118a   :  { %v1441_v62 = vmul.f32 0.6931472, %v3347_v52  ;;  %v3349_v28 = vpop.eup %3348 }
0x118b   :  { %v1822_v35 = vadd.f32 1.0, %v3349_v28  ;;  %v3351_v29 = vpop.eup %3350 }
0x118c   :  { %v1442_v1 = vadd.f32 %v1441_v62, %v1433_v41  ;;  %v1823_v33 = vadd.f32 1.0, %v3351_v29 }
0x118d   :  { %3352 = vrcp.f32 %v1822_v35 }
0x118e   :  { %v3884_v3 = vsub.f32 %v1430_v40, %v1442_v1  ;;  %3354 = vrcp.f32 %v1823_v33 }
0x1190   :  { %v1448_v4 = vadd.f32 %v1446_v2, %v3884_v3 }
0x1192   :  { %v1449_v9 = vsel %vm648_vm10, %v1448_v4, -inf }
0x1193   :  { %1450 = vmax.xlane.f32.xlu0 %v1449_v9 }
0x1197   :  { %v3353_v40 = vpop.eup %3352 }
0x1198   :  { %v3355_v43 = vpop.eup %3354  ;;  %v1868_v17 = vmul.f32 %v3353_v40, %v1864_v11 }
0x1199   :  { %v1853_v21 = vsub.f32 1.0, %v3355_v43 }
0x11a9   :  { %1832 = vrot.lane.b32.xlu0 %v1830_v12, %s3414_s22 }
0x11ad   :  { %1834 = vrot.lane.b32.xlu0 %v1831_v16, %s3414_s22  ;;  %v1865_v16 = vrot.slane %v3836_v24, 7 }
0x11af   :  { %v1869_v27 = vmul.f32 %v3355_v43, %v1865_v16 }
0x1220   :  { %v1451_v34 = vpop.xlane.xlu0 %1450 }
0x1221   :  { %vm1452_vm6 = vcmp.eq.f32.partialorder %v1448_v4, %v1451_v34  ;;  %v1852_v4 = vsub.f32 1.0, %v3353_v40 }
0x1222   :  { %v1453_v37 = vsel %vm1452_vm6, %v3702_v13, 8 }
0x1223   :  { %v1454_v39 = vsel %vm648_vm10, %v1453_v37, 2147483647 }
0x1224   :  { %v1833_v15 = vpop.permute.xlu0 %1832  ;;  %v1456_v57 = vshra.s32 %v1454_v39, 16  ;;  %v1455_v54 = vand.u32 65535, %v1454_v39 }
0x1225   :  { %v1838_v41 = vmul.f32 %v3353_v40, %v1833_v15 }
0x1226   :  { %v1458_v42 = vcvt.s32.f32 %v1456_v57  ;;  %v1457_v1 = vcvt.s32.f32 %v1455_v54  ;;  %v1706_v54 = vrot.slane %v3688_v59, 4 }
0x1227   :  { %1842 = vrot.lane.b32.xlu1 %v1838_v41, %s3414_s22 }
0x1228   :  { %1459 = vmin.xlane.f32.xlu0 %v1458_v42  ;;  %v1835_v48 = vpop.permute.xlu0 %1834 }
0x1229   :  { %v1839_v49 = vmul.f32 %v3355_v43, %v1835_v48 }
0x122b   :  { %1844 = vrot.lane.b32.xlu1 %v1839_v49, %s3414_s22 }
0x1299   :  { %v1843_v19 = vpop.permute.xlu1 %1842 }
0x129a   :  { %v1848_v56 = vadd.f32 %v1843_v19, %v3568_v46 }
0x129c   :  { %3356 = vtanh.f32 %v1848_v56 }
0x129d   :  { %v1845_v58 = vpop.permute.xlu1 %1844 }
0x129e   :  { %v1849_v61 = vadd.f32 %v1845_v58, %v3566_v44 }
0x12a0   :  { %3358 = vtanh.f32 %v1849_v61 }
0x12a1   :  { %3360 = vtanh.f32 %v1686_v18 }
0x12a6   :  { %v3357_v52 = vpop.eup %3356 }
0x12a7   :  { %1856 = vrot.lane.b32.xlu0 %v3357_v52, %s3415_s30 }
0x12aa   :  { %v3359_v53 = vpop.eup %3358 }
0x12ab   :  { %1858 = vrot.lane.b32.xlu0 %v3359_v53, %s3415_s30  ;;  %v3361_v39 = vpop.eup %3360 }
0x12ac   :  { %v1690_v15 = vmul.f32 10.0, %v3361_v39 }
0x12b5   :  { %v1460_v62 = vpop.xlane.xlu0 %1459 }
0x12b6   :  { %vm1461_vm7 = vcmp.eq.f32.partialorder %v1458_v42, %v1460_v62  ;;  %v1466_v24 = vcvt.f32.s32 %v1460_v62  ;;  %v1707_v62 = vrot.slane %v3682_v55, 3 }
0x12b7   :  { %v1462_v2 = vsel %vm1461_vm7, %v1457_v1, inf }
0x12b8   :  { %1463 = vmin.xlane.f32.xlu1 %v1462_v2  ;;  %v1467_v33 = vshll.u32 %v1466_v24, 16 }
0x1319   :  { %v1857_v9 = vpop.permute.xlu0 %1856 }
0x131a   :  { %v1862_v12 = vmul.f32 %v1857_v9, %v1852_v4  ;;  %v1708_v4 = vsel %vm568_vm9, %v1707_v62, %v1706_v54 }
0x131c   :  { %v3903_v25 = vadd.f32 %v1868_v17, %v1862_v12 }
0x131d   :  { %v1859_v22 = vpop.permute.xlu0 %1858 }
0x131e   :  { %v1863_v32 = vmul.f32 %v1859_v22, %v1853_v21  ;;  %v1874_v23 = vrot.slane %v3903_v25, 5 }
0x1320   :  { %v3905_v20 = vadd.f32 %v1869_v27, %v1863_v32 }
0x1322   :  { %v1875_v28 = vrot.slane %v3905_v20, 4 }
0x1324   :  { %v1876_v35 = vsel %vm568_vm9, %v1875_v28, %v1874_v23 }
0x1325   :  { %1877 = vrot.lane.b32.xlu1 %v1876_v35, %s3415_s30 }
0x1345   :  { %v1464_v29 = vpop.xlane.xlu1 %1463 }
0x1346   :  { %v1465_v34 = vcvt.f32.s32 %v1464_v29 }
0x1348   :  { %v3913_v37 = vadd.s32 %v1467_v33, %v1465_v34 }
0x134a   :  { %vm1469_vm3 = vcmp.eq.s32.totalorder %v3702_v13, %v3913_v37  ;;  %v3920_v40 = vsel %vm4247_vm11, %v3853_v47, %v3913_v37  ;;  %vm2795_vm11 = vcmask 1046528  }
0x134b   :  { %v2859_v60 = vsel %vm1469_vm3, 1.0, %v3411_v5 }
0x134c   :  { %v3927_v51 = vmax.f32 %v3860_v38, %v2859_v60 }
0x134e   :  { %vm1691_vm6 = vcmp.gt.f32.partialorder %v3927_v51, 0.0 }
0x134f   :  { %v1692_v57 = vsel %vm1691_vm6, -inf, %v1690_v15 }
0x1350   :  { %v1693_v41 = vsel %vm648_vm10, %v1692_v57, -inf }
0x1351   :  { %1694 = vmax.xlane.f32.xlu0 %v1693_v41 }
0x1397   :  { %v1878_v42 = vpop.permute.xlu1 %1877 }
0x1398   :  { %3116 = vmatmul.mubr.msk.f32.vlgmr.msra.gmra.mrb[16].mxu0 %vm164_vm4, %v1878_v42  ;;  %3127 = vmatmul.mubr.msk.f32.vlgmr.msra.gmra.mrb[16].mxu1 %vm164_vm4, %v1878_v42 }
0x1399   :  { %3242 = vmatpush3.bf16.msra.mxu0 %v3585_v8  ;;  %3248 = vmatpush3.bf16.msra.mxu1 %v3525_v26 }
0x139a   :  { %3243 = vmatprep.subr.bf16.mxu0 %v3413_v7  ;;  %3249 = vmatprep.subr.bf16.mxu1 %v3413_v7 }
0x139b   :  { %3137 = vmatprep.mubr.msk.f32.mxu0 %vm3412_vm2, %v3411_v5  ;;  %3148 = vmatprep.mubr.msk.f32.mxu1 %vm3412_vm2, %v3411_v5 }
0x139d   :  { %3245 = vmatpush3.bf16.msra.mxu0 %v3591_v10  ;;  %3251 = vmatpush3.bf16.msra.mxu1 %v3536_v30 }
0x139e   :  { %3252 = vmatprep.subr.bf16.mxu0 %v3413_v7 }
0x13de   :  { %v1695_v47 = vpop.xlane.xlu0 %1694 }
0x13df   :  { %v1696_v38 = vsub.f32 %v1692_v57, %v1695_v47 }
0x13e1   :  { %v1697_v43 = vmul.f32 1.442695, %v1696_v38 }
0x13e3   :  { %3362 = vpow2.f32 %v1697_v43 }
0x13ed   :  { %v3363_v26 = vpop.eup %3362 }
0x13ee   :  { %v1699_v48 = vsel %vm648_vm10, %v3363_v26, 0.0 }
0x13ef   :  { %1700 = vadd.xlane.f32.xlu1 %v1699_v48 }
0x146b   :  { %v3945_v49 = vpop.f32.mrb[16].mxu0  ;;  %v2067_v19 = vpop.f32.mrb[16].mxu1 }
0x146c   :  { %v2090_v56 = vadd.f32 %v2067_v19, %v3558_v36  ;;  %v3117_v58 = vpop.f32.mrb[17].mxu0  ;;  %v3128_v61 = vpop.f32.mrb[17].mxu1  ;;  %v2072_v27 = vrot.slane %v2067_v19, 2  ;;  %v2073_v32 = vrot.slane %v2067_v19, 3 }
0x146e   :  { %v2093_v52 = vrot.slane %v2090_v56, 3  ;;  %v2092_v55 = vrot.slane %v2090_v56, 2  ;;  %v2076_v23 = vadd.f32 %v2072_v27, %v3568_v46  ;;  %v2077_v28 = vadd.f32 %v2073_v32, %v3566_v44 }
0x1470   :  { %2096 = vrot.lane.b32.xlu1 %v2093_v52, %s3414_s22  ;;  %v2078_v35 = vsub.f32 0.0, %v2076_v23  ;;  %v2079_v18 = vsub.f32 0.0, %v2077_v28  ;;  %v2127_v28 = vrot.slane %v3905_v20, 7 }
0x1472   :  { %v2080_v24 = vmul.f32 1.442695, %v2078_v35  ;;  %v2082_v29 = vmul.f32 1.442695, %v2079_v18 }
0x147c   :  { %v1701_v30 = vpop.xlane.xlu1 %1700 }
0x147d   :  { %3364 = vlog2.f32 %v1701_v30 }
0x147e   :  { %3366 = vpow2.f32 %v2080_v24 }
0x147f   :  { %3368 = vpow2.f32 %v2082_v29 }
0x1487   :  { %v3365_v53 = vpop.eup %3364 }
0x1488   :  { %v1703_v1 = vmul.f32 0.6931472, %v3365_v53  ;;  %v3367_v33 = vpop.eup %3366  ;;  %v3968_v53 = vld [vmem:[%s4239_s9] ss:$0 sm:$0xff] }
0x1489   :  { %v2084_v34 = vadd.f32 1.0, %v3367_v33  ;;  %v3369_v39 = vpop.eup %3368  ;;  %v1948_v54 = vadd.f32 %v3968_v53, %v3945_v49 }
0x148a   :  { %v1704_v2 = vadd.f32 %v1703_v1, %v1695_v47  ;;  %v2085_v60 = vadd.f32 1.0, %v3369_v39 }
0x148b   :  { %3370 = vrcp.f32 %v2084_v34 }
0x148c   :  { %v3952_v9 = vsub.f32 %v1692_v57, %v1704_v2  ;;  %3372 = vrcp.f32 %v2085_v60 }
0x148e   :  { %v1710_v11 = vadd.f32 %v1708_v4, %v3952_v9 }
0x1490   :  { %v1711_v12 = vsel %vm648_vm10, %v1710_v11, -inf }
0x1491   :  { %1712 = vmax.xlane.f32.xlu0 %v1711_v12 }
0x1495   :  { %v3371_v47 = vpop.eup %3370 }
0x1496   :  { %v3373_v48 = vpop.eup %3372  ;;  %v2114_v27 = vsub.f32 1.0, %v3371_v47 }
0x1497   :  { %v2115_v18 = vsub.f32 1.0, %v3373_v48 }
0x14e2   :  { %v2097_v26 = vpop.permute.xlu1 %2096 }
0x14e3   :  { %v2101_v19 = vmul.f32 %v3373_v48, %v2097_v26  ;;  %v4013_v26 = vld [vmem:[%s4240_s1] sm:$0xff] }
0x151e   :  { %v1713_v16 = vpop.xlane.xlu0 %1712 }
0x151f   :  { %vm1714_vm7 = vcmp.eq.f32.partialorder %v1710_v11, %v1713_v16 }
0x1520   :  { %v1715_v17 = vsel %vm1714_vm7, %v3702_v13, 8 }
0x1521   :  { %v1716_v21 = vsel %vm648_vm10, %v1715_v17, 2147483647 }
0x1522   :  { %v1718_v59 = vshra.s32 %v1716_v21, 16  ;;  %v1717_v15 = vand.u32 65535, %v1716_v21 }
0x1524   :  { %v1720_v22 = vcvt.s32.f32 %v1718_v59  ;;  %v1719_v41 = vcvt.s32.f32 %v1717_v15 }
0x1526   :  { %1721 = vmin.xlane.f32.xlu0 %v1720_v22 }
0x153c   :  { %2094 = vrot.lane.b32.xlu0 %v2092_v55, %s3414_s22 }
0x15b3   :  { %v1722_v57 = vpop.xlane.xlu0 %1721 }
0x15b4   :  { %vm1723_vm6 = vcmp.eq.f32.partialorder %v1720_v22, %v1722_v57  ;;  %v1728_v1 = vcvt.f32.s32 %v1722_v57 }
0x15b5   :  { %v1724_v42 = vsel %vm1723_vm6, %v1719_v41, inf }
0x15b6   :  { %1725 = vmin.xlane.f32.xlu0 %v1724_v42  ;;  %v1729_v4 = vshll.u32 %v1728_v1, 16 }
0x15b7   :  { %v2095_v38 = vpop.permute.xlu0 %2094 }
0x15b8   :  { %v2100_v43 = vmul.f32 %v3371_v47, %v2095_v38 }
0x15ba   :  { %2104 = vrot.lane.b32.xlu1 %v2100_v43, %s3414_s22 }
0x15be   :  { %2106 = vrot.lane.b32.xlu1 %v2101_v19, %s3414_s22 }
0x162c   :  { %v2105_v56 = vpop.permute.xlu1 %2104 }
0x162d   :  { %v2110_v58 = vadd.f32 %v2105_v56, %v3568_v46 }
0x162f   :  { %3374 = vtanh.f32 %v2110_v58 }
0x1630   :  { %v2107_v61 = vpop.permute.xlu1 %2106 }
0x1631   :  { %v2111_v52 = vadd.f32 %v2107_v61, %v3566_v44 }
0x1633   :  { %3376 = vtanh.f32 %v2111_v52 }
0x1634   :  { %3378 = vtanh.f32 %v1948_v54 }
0x1639   :  { %v3375_v30 = vpop.eup %3374 }
0x163a   :  { %2118 = vrot.lane.b32.xlu0 %v3375_v30, %s3415_s30 }
0x163d   :  { %v3377_v62 = vpop.eup %3376 }
0x163e   :  { %2120 = vrot.lane.b32.xlu0 %v3377_v62, %s3415_s30  ;;  %v3379_v16 = vpop.eup %3378 }
0x163f   :  { %v1952_v59 = vmul.f32 10.0, %v3379_v16 }
0x1643   :  { %v1726_v2 = vpop.xlane.xlu0 %1725 }
0x1644   :  { %v1727_v11 = vcvt.f32.s32 %v1726_v2 }
0x1646   :  { %v3974_v12 = vadd.s32 %v1729_v4, %v1727_v11 }
0x1648   :  { %vm1731_vm7 = vcmp.eq.s32.totalorder %v3702_v13, %v3974_v12  ;;  %v3981_v49 = vsel %vm4244_vm1, %v3920_v40, %v3974_v12  ;;  %v2126_v40 = vrot.slane %v3903_v25, 7 }
0x1649   :  { %v2862_v17 = vsel %vm1731_vm7, 1.0, %v3411_v5 }
0x164a   :  { %v3988_v21 = vmax.f32 %v3927_v51, %v2862_v17  ;;  %v2130_v35 = vmul.f32 %v3371_v47, %v2126_v40  ;;  %v2131_v51 = vmul.f32 %v3373_v48, %v2127_v28  ;;  %v1968_v48 = vrot.slane %v4013_v26, 5 }
0x164c   :  { %vm1953_vm6 = vcmp.gt.f32.partialorder %v3988_v21, 0.0 }
0x164d   :  { %v1954_v22 = vsel %vm1953_vm6, -inf, %v1952_v59 }
0x164e   :  { %v1955_v55 = vsel %vm648_vm10, %v1954_v22, -inf }
0x164f   :  { %1956 = vmax.xlane.f32.xlu1 %v1955_v55 }
0x16ac   :  { %v2119_v32 = vpop.permute.xlu0 %2118 }
0x16ad   :  { %v2124_v23 = vmul.f32 %v2119_v32, %v2114_v27 }
0x16af   :  { %v3994_v29 = vadd.f32 %v2130_v35, %v2124_v23 }
0x16b0   :  { %v2121_v24 = vpop.permute.xlu0 %2120 }
0x16b1   :  { %v2125_v33 = vmul.f32 %v2121_v24, %v2115_v18  ;;  %v2136_v39 = vrot.slane %v3994_v29, 6 }
0x16b3   :  { %v3996_v34 = vadd.f32 %v2131_v51, %v2125_v33 }
0x16b5   :  { %v2137_v60 = vrot.slane %v3996_v34, 5 }
0x16b7   :  { %v2138_v15 = vsel %vm568_vm9, %v2137_v60, %v2136_v39 }
0x16b8   :  { %2139 = vrot.lane.b32.xlu1 %v2138_v15, %s3415_s30 }
0x16dc   :  { %v1957_v25 = vpop.xlane.xlu1 %1956 }
0x16dd   :  { %v1958_v57 = vsub.f32 %v1954_v22, %v1957_v25 }
0x16df   :  { %v1959_v20 = vmul.f32 1.442695, %v1958_v57 }
0x16e1   :  { %3380 = vpow2.f32 %v1959_v20 }
0x16eb   :  { %v3381_v41 = vpop.eup %3380 }
0x16ec   :  { %v1961_v42 = vsel %vm648_vm10, %v3381_v41, 0.0 }
0x16ed   :  { %1962 = vadd.xlane.f32.xlu0 %v1961_v42 }
0x172a   :  { %v2140_v47 = vpop.permute.xlu1 %2139 }
0x172b   :  { %3138 = vmatmul.mubr.msk.f32.vlgmr.msra.gmra.mrb[18].mxu0 %vm164_vm4, %v2140_v47  ;;  %3149 = vmatmul.mubr.msk.f32.vlgmr.msra.gmra.mrb[18].mxu1 %vm164_vm4, %v2140_v47 }
0x172c   :  { %3254 = vmatpush3.bf16.msra.mxu0 %v3585_v8  ;;  %3159 = vmatprep.mubr.msk.f32.mxu0 %vm3412_vm2, %v3411_v5  ;;  %v4019_v8 = vld [vmem:[%s4240_s1 + $0x8] sm:$0xff] }
0x172d   :  { %3255 = vmatprep.subr.bf16.mxu0 %v3413_v7  ;;  %v1969_v19 = vrot.slane %v4019_v8, 4 }
0x1730   :  { %3257 = vmatpush3.bf16.msra.mxu0 %v3591_v10  ;;  %v1970_v10 = vsel %vm568_vm9, %v1969_v19, %v1968_v48 }
0x177a   :  { %v1963_v38 = vpop.xlane.xlu0 %1962 }
0x177b   :  { %3382 = vlog2.f32 %v1963_v38 }
0x1785   :  { %v3383_v43 = vpop.eup %3382 }
0x1786   :  { %v1965_v7 = vmul.f32 0.6931472, %v3383_v43 }
0x1788   :  { %v1966_v56 = vadd.f32 %v1965_v7, %v1957_v25 }
0x178a   :  { %v4023_v58 = vsub.f32 %v1954_v22, %v1966_v56 }
0x178c   :  { %v1972_v61 = vadd.f32 %v1970_v10, %v4023_v58 }
0x178e   :  { %v1973_v52 = vsel %vm648_vm10, %v1972_v61, -inf }
0x178f   :  { %1974 = vmax.xlane.f32.xlu1 %v1973_v52 }
0x17fe   :  { %v2209_v30 = vpop.f32.mrb[18].mxu0  ;;  %v2329_v54 = vpop.f32.mrb[18].mxu1 }
0x17ff   :  { %v2352_v62 = vadd.f32 %v2329_v54, %v3558_v36  ;;  %v3139_v1 = vpop.f32.mrb[19].mxu0  ;;  %v3150_v2 = vpop.f32.mrb[19].mxu1  ;;  %v2334_v23 = vrot.slane %v2329_v54, 1  ;;  %v2335_v28 = vrot.slane %v2329_v54, 2  ;;  %v2210_v57 = vadd.f32 %v3968_v53, %v2209_v30 }
0x1801   :  { %v2355_v4 = vrot.slane %v2352_v62, 2  ;;  %v2354_v36 = vrot.slane %v2352_v62, 1  ;;  %v2338_v35 = vadd.f32 %v2334_v23, %v3568_v46  ;;  %v2339_v18 = vadd.f32 %v2335_v28, %v3566_v44 }
0x1802   :  { %v2388_v23 = vrot.slane %v3994_v29, 7  ;;  %v2389_v28 = vrot.slane %v3996_v34, 7  ;;  %v2230_v29 = vrot.slane %v4013_v26, 6  ;;  %v2231_v34 = vrot.slane %v4019_v8, 5 }
0x1803   :  { %2358 = vrot.lane.b32.xlu1 %v2355_v4, %s3414_s22  ;;  %v2340_v24 = vsub.f32 0.0, %v2338_v35  ;;  %v2341_v51 = vsub.f32 0.0, %v2339_v18 }
0x1805   :  { %v2342_v33 = vmul.f32 1.442695, %v2340_v24  ;;  %v2344_v39 = vmul.f32 1.442695, %v2341_v51 }
0x1807   :  { %3384 = vpow2.f32 %v2342_v33 }
0x1808   :  { %3386 = vpow2.f32 %v2344_v39 }
0x1811   :  { %v3385_v60 = vpop.eup %3384 }
0x1812   :  { %v2346_v15 = vadd.f32 1.0, %v3385_v60  ;;  %v3387_v25 = vpop.eup %3386 }
0x1813   :  { %v2347_v20 = vadd.f32 1.0, %v3387_v25 }
0x1814   :  { %3388 = vrcp.f32 %v2346_v15 }
0x1815   :  { %3390 = vtanh.f32 %v2210_v57 }
0x1816   :  { %3392 = vrcp.f32 %v2347_v20 }
0x181c   :  { %v1975_v11 = vpop.xlane.xlu1 %1974 }
0x181d   :  { %vm1976_vm2 = vcmp.eq.f32.partialorder %v1972_v61, %v1975_v11 }
0x181e   :  { %v1977_v16 = vsel %vm1976_vm2, %v3702_v13, 8  ;;  %vm4245_vm2 = vcmask 39936   ;;  %v3389_v48 = vpop.eup %3388 }
0x181f   :  { %v1978_v17 = vsel %vm648_vm10, %v1977_v16, 2147483647  ;;  %v3391_v7 = vpop.eup %3390  ;;  %v2392_v35 = vmul.f32 %v3389_v48, %v2388_v23 }
0x1820   :  { %v1980_v59 = vshra.s32 %v1978_v17, 16  ;;  %v1979_v55 = vand.u32 65535, %v1978_v17  ;;  %v3393_v54 = vpop.eup %3392  ;;  %v2214_v62 = vmul.f32 10.0, %v3391_v7 }
0x1821   :  { %v2377_v18 = vsub.f32 1.0, %v3393_v54  ;;  %v2393_v33 = vmul.f32 %v3393_v54, %v2389_v28 }
0x1822   :  { %v1982_v22 = vcvt.s32.f32 %v1980_v59  ;;  %v1981_v32 = vcvt.s32.f32 %v1979_v55 }
0x1824   :  { %1983 = vmin.xlane.f32.xlu0 %v1982_v22 }
0x1875   :  { %v2359_v61 = vpop.permute.xlu1 %2358 }
0x1876   :  { %v2363_v1 = vmul.f32 %v3393_v54, %v2359_v61 }
0x18b1   :  { %v1984_v27 = vpop.xlane.xlu0 %1983 }
0x18b2   :  { %vm1985_vm6 = vcmp.eq.f32.partialorder %v1982_v22, %v1984_v27  ;;  %v1990_v41 = vcvt.f32.s32 %v1984_v27 }
0x18b3   :  { %v1986_v40 = vsel %vm1985_vm6, %v1981_v32, inf }
0x18b4   :  { %1987 = vmin.xlane.f32.xlu0 %v1986_v40  ;;  %v1991_v47 = vshll.u32 %v1990_v41, 16 }
0x18ca   :  { %2356 = vrot.lane.b32.xlu0 %v2354_v36, %s3414_s22 }
0x1941   :  { %v1988_v42 = vpop.xlane.xlu0 %1987 }
0x1942   :  { %v1989_v38 = vcvt.f32.s32 %v1988_v42 }
0x1944   :  { %v4035_v43 = vadd.s32 %v1991_v47, %v1989_v38  ;;  %v2232_v38 = vsel %vm568_vm9, %v2231_v34, %v2230_v29 }
0x1945   :  { %v2357_v19 = vpop.permute.xlu0 %2356 }
0x1946   :  { %vm1993_vm6 = vcmp.eq.s32.totalorder %v3702_v13, %v4035_v43  ;;  %v2362_v56 = vmul.f32 %v3389_v48, %v2357_v19  ;;  %v4042_v10 = vsel %vm4245_vm2, %v3981_v49, %v4035_v43 }
0x1947   :  { %v2865_v52 = vsel %vm1993_vm6, 1.0, %v3411_v5 }
0x1948   :  { %2366 = vrot.lane.b32.xlu0 %v2362_v56, %s3414_s22  ;;  %v4050_v30 = vmax.f32 %v3988_v21, %v2865_v52 }
0x194a   :  { %vm2215_vm1 = vcmp.gt.f32.partialorder %v4050_v30, 0.0 }
0x194b   :  { %v2216_v2 = vsel %vm2215_vm1, -inf, %v2214_v62 }
0x194c   :  { %2368 = vrot.lane.b32.xlu0 %v2363_v1, %s3414_s22  ;;  %v2217_v49 = vsel %vm648_vm10, %v2216_v2, -inf }
0x194d   :  { %2218 = vmax.xlane.f32.xlu1 %v2217_v49 }
0x19ba   :  { %v2367_v4 = vpop.permute.xlu0 %2366 }
0x19bb   :  { %v2372_v11 = vadd.f32 %v2367_v4, %v3568_v46  ;;  %v2376_v46 = vsub.f32 1.0, %v3389_v48 }
0x19bd   :  { %3394 = vtanh.f32 %v2372_v11 }
0x19be   :  { %v2369_v16 = vpop.permute.xlu0 %2368 }
0x19bf   :  { %v2373_v17 = vadd.f32 %v2369_v16, %v3566_v44 }
0x19c1   :  { %3396 = vtanh.f32 %v2373_v17 }
0x19c7   :  { %v3395_v21 = vpop.eup %3394 }
0x19c8   :  { %2380 = vrot.lane.b32.xlu0 %v3395_v21, %s3415_s30 }
0x19cb   :  { %v3397_v59 = vpop.eup %3396 }
0x19cc   :  { %2382 = vrot.lane.b32.xlu0 %v3397_v59, %s3415_s30 }
0x19da   :  { %v2219_v22 = vpop.xlane.xlu1 %2218 }
0x19db   :  { %v2220_v55 = vsub.f32 %v2216_v2, %v2219_v22 }
0x19dd   :  { %v2221_v27 = vmul.f32 1.442695, %v2220_v55 }
0x19df   :  { %3398 = vpow2.f32 %v2221_v27 }
0x19e9   :  { %v3399_v32 = vpop.eup %3398 }
0x19ea   :  { %v2223_v40 = vsel %vm648_vm10, %v3399_v32, 0.0 }
0x19eb   :  { %2224 = vadd.xlane.f32.xlu0 %v2223_v40 }
0x1a3a   :  { %v2381_v36 = vpop.permute.xlu0 %2380 }
0x1a3b   :  { %v2386_v44 = vmul.f32 %v2381_v36, %v2376_v46 }
0x1a3d   :  { %v2394_v51 = vadd.f32 %v2392_v35, %v2386_v44 }
0x1a3e   :  { %v2383_v24 = vpop.permute.xlu0 %2382 }
0x1a3f   :  { %v2387_v39 = vmul.f32 %v2383_v24, %v2377_v18  ;;  %v2398_v15 = vrot.slane %v2394_v51, 7 }
0x1a41   :  { %v2395_v60 = vadd.f32 %v2393_v33, %v2387_v39  ;;  %v3416_v33 = vmov 1966171168  }
0x1a42   :  { %v2524_v39 = vunpack.c.l.s4 %v3416_v33 }
0x1a43   :  { %v2399_v25 = vrot.slane %v2395_v60, 6 }
0x1a44   :  { %v2525_v60 = vunpack.c.0.s8 %v2524_v39 }
0x1a45   :  { %v2400_v57 = vsel %vm568_vm9, %v2399_v25, %v2398_v15  ;;  %v2527_v15 = vshrl.u32 %v419_v63, 7 }
0x1a46   :  { %2401 = vrot.lane.b32.xlu1 %v2400_v57, %s3415_s30 }
0x1a47   :  { %v4101_v25 = vsub.s32 %v2525_v60, %v2527_v15 }
0x1a49   :  { %v2554_v43 = vrot.slane %v3759_v45, %v4101_v25  ;;  %v2577_v29 = vrot.slane %v3815_v6, %v4101_v25  ;;  %v2600_v34 = vrot.slane %v3884_v3, %v4101_v25 }
0x1a4b   :  { %v2562_v63 = vrot.slane %v2554_v43, %v4101_v25 }
0x1a78   :  { %v2225_v20 = vpop.xlane.xlu0 %2224 }
0x1a79   :  { %3400 = vlog2.f32 %v2225_v20  ;;  %v2529_v20 = vrot.slane %v3693_v0, %v4101_v25 }
0x1a83   :  { %v3401_v41 = vpop.eup %3400 }
0x1a84   :  { %v2227_v42 = vmul.f32 0.6931472, %v3401_v41  ;;  %v2555_v41 = vcombine.high %v2554_v43, %v2554_v43 }
0x1a86   :  { %v2228_v47 = vadd.f32 %v2227_v42, %v2219_v22  ;;  %v2530_v42 = vcombine.high %v2529_v20, %v2529_v20 }
0x1a88   :  { %v4067_v48 = vsub.f32 %v2216_v2, %v2228_v47  ;;  %v4112_v47 = vsub.s32 0, %v2527_v15 }
0x1a8a   :  { %v2234_v19 = vadd.f32 %v2232_v38, %v4067_v48  ;;  %v2623_v38 = vrot.slane %v3952_v9, %v4101_v25 }
0x1a8c   :  { %v2235_v7 = vsel %vm648_vm10, %v2234_v19, -inf }
0x1a8d   :  { %2236 = vmax.xlane.f32.xlu0 %v2235_v7  ;;  %v2569_v7 = vrot.slane %v2555_v41, %v4101_v25 }
0x1ab8   :  { %v2402_v56 = vpop.permute.xlu1 %2401 }
0x1ab9   :  { %3160 = vmatmul.mubr.msk.f32.vlgmr.msra.gmra.mrb[20].mxu0 %vm164_vm4, %v2402_v56  ;;  %vm4246_vm4 = vcmask 48128   ;;  %v2578_v56 = vcombine.high %v2577_v29, %v2577_v29 }
0x1b1a   :  { %v2237_v61 = vpop.xlane.xlu0 %2236 }
0x1b1b   :  { %vm2238_vm1 = vcmp.eq.f32.partialorder %v2234_v19, %v2237_v61  ;;  %v2646_v19 = vrot.slane %v4023_v58, %v4101_v25  ;;  %v2537_v61 = vrot.slane %v2529_v20, %v4101_v25 }
0x1b1c   :  { %v2239_v52 = vsel %vm2238_vm1, %v3702_v13, 8 }
0x1b1d   :  { %v2240_v54 = vsel %vm648_vm10, %v2239_v52, 2147483647  ;;  %v2585_v52 = vrot.slane %v2577_v29, %v4101_v25 }
0x1b1e   :  { %v2242_v62 = vshra.s32 %v2240_v54, 16  ;;  %v2241_v4 = vand.u32 65535, %v2240_v54  ;;  %v2601_v54 = vcombine.high %v2600_v34, %v2600_v34 }
0x1b20   :  { %v2244_v1 = vcvt.s32.f32 %v2242_v62  ;;  %v2243_v16 = vcvt.s32.f32 %v2241_v4  ;;  %v2669_v62 = vrot.slane %v4067_v48, %v4101_v25 }
0x1b22   :  { %2245 = vmin.xlane.f32.xlu0 %v2244_v1 }
0x1b8c   :  { %v2471_v49 = vpop.f32.mrb[20].mxu0 }
0x1b8d   :  { %v3161_v2 = vpop.f32.mrb[21].mxu0  ;;  %v2472_v21 = vadd.f32 %v3968_v53, %v2471_v49  ;;  %v2711_v49 = vrot.slane %v2562_v63, %v4112_v47 }
0x1b8e   :  { %v2608_v2 = vrot.slane %v2600_v34, %v4101_v25 }
0x1b8f   :  { %3402 = vtanh.f32 %v2472_v21  ;;  %v2715_v21 = vrot.slane %v2569_v7, %v4112_v47 }
0x1b99   :  { %v3403_v40 = vpop.eup %3402 }
0x1b9a   :  { %v2476_v23 = vmul.f32 10.0, %v3403_v40  ;;  %v2631_v40 = vrot.slane %v2623_v38, %v4101_v25 }
0x1b9c   :  { %v2741_v39 = vrot.slane %v2631_v40, %v4112_v47  ;;  %v689_v40 = vsel %vm688_vm13, %v3693_v0, 0.0  ;;  %v1470_v0 = vsel %vm1469_vm3, %v3884_v3, 0.0  ;;  %vm4251_vm3 = vcmask 48128  }
0x1b9d   :  { %v1471_v50 = vsel %vm648_vm10, %v1470_v0, 0.0 }
0x1baf   :  { %v2246_v11 = vpop.xlane.xlu0 %2245 }
0x1bb0   :  { %vm2247_vm2 = vcmp.eq.f32.partialorder %v2244_v1, %v2246_v11  ;;  %v2252_v59 = vcvt.f32.s32 %v2246_v11  ;;  %v2544_v1 = vrot.slane %v2530_v42, %v4101_v25  ;;  %v2647_v11 = vcombine.high %v2646_v19, %v2646_v19 }
0x1bb1   :  { %v2248_v17 = vsel %vm2247_vm2, %v2243_v16, inf  ;;  %v2492_v16 = vrot.slane %v4013_v26, 7  ;;  %v2654_v26 = vrot.slane %v2646_v19, %v4101_v25 }
0x1bb2   :  { %2249 = vmin.xlane.f32.xlu0 %v2248_v17  ;;  %v2253_v55 = vshll.u32 %v2252_v59, 16  ;;  %v2493_v17 = vrot.slane %v4019_v8, 6  ;;  %v2592_v59 = vrot.slane %v2578_v56, %v4101_v25 }
0x1bb3   :  { %v2751_v43 = vrot.slane %v2654_v26, %v4112_v47 }
0x1c3f   :  { %v2250_v22 = vpop.xlane.xlu0 %2249 }
0x1c40   :  { %v2251_v27 = vcvt.f32.s32 %v2250_v22 }
0x1c42   :  { %v4075_v32 = vadd.s32 %v2253_v55, %v2251_v27  ;;  %v2721_v55 = vrot.slane %v2585_v52, %v4112_v47  ;;  %v2615_v27 = vrot.slane %v2601_v54, %v4101_v25 }
0x1c44   :  { %vm2255_vm1 = vcmp.eq.s32.totalorder %v3702_v13, %v4075_v32  ;;  %v4082_v46 = vsel %vm4246_vm4, %v4042_v10, %v4075_v32  ;;  %v1994_v10 = vsel %vm1993_vm6, %v4023_v58, 0.0  ;;  %vm2778_vm6 = vcmask 1040384  }
0x1c45   :  { %v2868_v53 = vsel %vm2255_vm1, 1.0, %v3411_v5  ;;  %v1995_v35 = vsel %vm648_vm10, %v1994_v10, 0.0  ;;  %v2624_v58 = vcombine.high %v2623_v38, %v2623_v38  ;;  %vm2784_vm4 = vcmask 1042432  }
0x1c46   :  { %v2262_v36 = vmax.f32 %v4050_v30, %v2868_v53  ;;  %v2670_v53 = vcombine.high %v2669_v62, %v2669_v62  ;;  %v2677_v10 = vrot.slane %v2669_v62, %v4101_v25 }
0x1c47   :  { %v2638_v8 = vrot.slane %v2624_v58, %v4101_v25 }
0x1c48   :  { %vm2477_vm2 = vcmp.gt.f32.partialorder %v2262_v36, 0.0  ;;  %v2731_v36 = vrot.slane %v2608_v2, %v4112_v47  ;;  %v2684_v60 = vrot.slane %v2670_v53, %v4101_v25  ;;  %v2761_v29 = vrot.slane %v2677_v10, %v4112_v47 }
0x1c49   :  { %v4089_v44 = vsel %vm2477_vm2, -inf, %v2476_v23  ;;  %vm2781_vm2 = vcmask 1041408   ;;  %v690_v53 = vsel %vm648_vm10, %v689_v40, 0.0 }
0x1c4a   :  { %v2479_v28 = vsel %vm648_vm10, %v4089_v44, -inf  ;;  %v2765_v7 = vrot.slane %v2684_v60, %v4112_v47 }
0x1c4b   :  { %2480 = vmax.xlane.f32.xlu1 %v2479_v28  ;;  %v2661_v28 = vrot.slane %v2647_v11, %v4101_v25 }
0x1c4d   :  { %v2755_v41 = vrot.slane %v2661_v28, %v4112_v47 }
0x1c4f   :  { %1996 = vadd.xlane.f32.xlu1 %v1995_v35  ;;  %v2494_v35 = vsel %vm568_vm9, %v2493_v17, %v2492_v16  ;;  %vm2789_vm9 = vcmask 1044480  }
0x1cd8   :  { %v2481_v18 = vpop.xlane.xlu1 %2480 }
0x1cd9   :  { %v2482_v5 = vsub.f32 %v4089_v44, %v2481_v18 }
0x1cdb   :  { %v2483_v30 = vmul.f32 1.442695, %v2482_v5  ;;  %v2779_v5 = vsel %vm2778_vm6, %v2537_v61, %v2711_v49 }
0x1cdc   :  { %v2782_v33 = vsel %vm2781_vm2, %v2779_v5, %v2721_v55 }
0x1cdd   :  { %3404 = vpow2.f32 %v2483_v30  ;;  %v2780_v30 = vsel %vm2778_vm6, %v2544_v1, %v2715_v21  ;;  %v2785_v15 = vsel %vm2784_vm4, %v2782_v33, %v2731_v36  ;;  %vm2792_vm6 = vcmask 1045504  }
0x1cde   :  { %v2787_v19 = vsel %vm63_vm0, %v2785_v15, %v2741_v39  ;;  %v946_v36 = vsel %vm945_vm5, %v3759_v45, 0.0  ;;  %v1732_v45 = vsel %vm1731_vm7, %v3952_v9, 0.0  ;;  %vm4248_vm5 = vcmask 23552  }
0x1cdf   :  { %v2790_v61 = vsel %vm2789_vm9, %v2787_v19, %v2751_v43  ;;  %v947_v26 = vsel %vm648_vm10, %v946_v36, 0.0  ;;  %v1733_v14 = vsel %vm648_vm10, %v1732_v45, 0.0 }
0x1ce0   :  { %v2793_v1 = vsel %vm2792_vm6, %v2790_v61, %v2761_v29 }
0x1ce7   :  { %v3405_v24 = vpop.eup %3404 }
0x1ce8   :  { %v2485_v51 = vsel %vm648_vm10, %v3405_v24, 0.0  ;;  %v2725_v24 = vrot.slane %v2592_v59, %v4112_v47 }
0x1ce9   :  { %2486 = vadd.xlane.f32.xlu0 %v2485_v51 }
0x1cea   :  { %v2783_v38 = vsel %vm2781_vm2, %v2780_v30, %v2725_v24 }
0x1d76   :  { %v2487_v57 = vpop.xlane.xlu0 %2486 }
0x1d77   :  { %3406 = vlog2.f32 %v2487_v57 }
0x1d81   :  { %v3407_v4 = vpop.eup %3406 }
0x1d82   :  { %v2489_v22 = vmul.f32 0.6931472, %v3407_v4 }
0x1d84   :  { %v2490_v23 = vadd.f32 %v2489_v22, %v2481_v18  ;;  %v2735_v18 = vrot.slane %v2615_v27, %v4112_v47 }
0x1d86   :  { %v4143_v51 = vsub.f32 %v4089_v44, %v2490_v23  ;;  %v2745_v44 = vrot.slane %v2638_v8, %v4112_v47  ;;  %v2786_v56 = vsel %vm2784_vm4, %v2783_v38, %v2735_v18  ;;  %v1208_v23 = vsel %vm1207_vm15, %v3815_v6, 0.0 }
0x1d87   :  { %v1209_v8 = vsel %vm648_vm10, %v1208_v23, 0.0  ;;  %v2256_v6 = vsel %vm2255_vm1, %v4067_v48, 0.0  ;;  %vm4249_vm15 = vcmask 31744  }
0x1d88   :  { %v2692_v57 = vrot.slane %v4143_v51, %v4101_v25  ;;  %v2496_v20 = vadd.f32 %v2494_v35, %v4143_v51  ;;  %v2788_v62 = vsel %vm63_vm0, %v2786_v56, %v2745_v44  ;;  %v2257_v31 = vsel %vm648_vm10, %v2256_v6, 0.0 }
0x1d89   :  { %v2791_v49 = vsel %vm2789_vm9, %v2788_v62, %v2755_v41 }
0x1d8a   :  { %v2693_v34 = vcombine.high %v2692_v57, %v2692_v57  ;;  %v2700_v42 = vrot.slane %v2692_v57, %v4101_v25  ;;  %v2497_v63 = vsel %vm648_vm10, %v2496_v20, -inf  ;;  %v2794_v58 = vsel %vm2792_vm6, %v2791_v49, %v2765_v7 }
0x1d8b   :  { %2498 = vmax.xlane.f32.xlu0 %v2497_v63 }
0x1d8c   :  { %v2707_v52 = vrot.slane %v2693_v34, %v4101_v25  ;;  %v2771_v54 = vrot.slane %v2700_v42, %v4112_v47 }
0x1d8e   :  { %v2775_v2 = vrot.slane %v2707_v52, %v4112_v47  ;;  %v2796_v4 = vsel %vm2795_vm11, %v2793_v1, %v2771_v54 }
0x1d8f   :  { %2798 = vst.msk [vmem:[%s4241_s10] sm:$0xff] %vm325_vm8, %v2796_v4 }
0x1d90   :  { %v2797_v11 = vsel %vm2795_vm11, %v2794_v58, %v2775_v2  ;;  %vm4250_vm11 = vcmask 39936  }
0x1d91   :  { %2799 = vst.msk [vmem:[%s4241_s10 + $0x8] sm:$0xff] %vm325_vm8, %v2797_v11  ;;  %vm2811_vm8 = vcmask 56320  }
0x1e18   :  { %v2499_v25 = vpop.xlane.xlu0 %2498 }
0x1e19   :  { %vm2500_vm0 = vcmp.eq.f32.partialorder %v2496_v20, %v2499_v25 }
0x1e1a   :  { %v2501_v16 = vsel %vm2500_vm0, %v3702_v13, 8 }
0x1e1b   :  { %v2502_v47 = vsel %vm648_vm10, %v2501_v16, 2147483647 }
0x1e1c   :  { %v2504_v17 = vshra.s32 %v2502_v47, 16  ;;  %v2503_v59 = vand.u32 65535, %v2502_v47 }
0x1e1e   :  { %v2506_v21 = vcvt.s32.f32 %v2504_v17  ;;  %v2505_v55 = vcvt.s32.f32 %v2503_v59 }
0x1e20   :  { %2507 = vmin.xlane.f32.xlu0 %v2506_v21 }
0x1ead   :  { %v2508_v22 = vpop.xlane.xlu0 %2507 }
0x1eae   :  { %vm2509_vm4 = vcmp.eq.f32.partialorder %v2506_v21, %v2508_v22  ;;  %v2514_v3 = vcvt.f32.s32 %v2508_v22 }
0x1eaf   :  { %v2510_v27 = vsel %vm2509_vm4, %v2505_v55, inf }
0x1eb0   :  { %2511 = vmin.xlane.f32.xlu0 %v2510_v27  ;;  %v2515_v28 = vshll.u32 %v2514_v3, 16 }
0x1eb4   :  { %691 = vadd.xlane.f32.xlu0 %v690_v53 }
0x1eb8   :  { %948 = vadd.xlane.f32.xlu0 %v947_v26 }
0x1ebc   :  { %1210 = vadd.xlane.f32.xlu0 %v1209_v8 }
0x1ec0   :  { %1472 = vadd.xlane.f32.xlu0 %v1471_v50 }
0x1ec4   :  { %1734 = vadd.xlane.f32.xlu0 %v1733_v14 }
0x1ec8   :  { %2258 = vadd.xlane.f32.xlu0 %v2257_v31 }
0x1f3d   :  { %v2512_v37 = vpop.xlane.xlu0 %2511 }
0x1f3e   :  { %v2513_v10 = vcvt.f32.s32 %v2512_v37 }
0x1f40   :  { %v2516_v35 = vadd.s32 %v2515_v28, %v2513_v10 }
0x1f41   :  { %v692_v32 = vpop.xlane.xlu0 %691 }
0x1f42   :  { %vm2517_vm13 = vcmp.eq.s32.totalorder %v3702_v13, %v2516_v35  ;;  %v2812_v9 = vsel %vm2811_vm8, %v4082_v46, %v2516_v35 }
0x1f43   :  { %v2518_v12 = vsel %vm2517_vm13, %v4143_v51, 0.0  ;;  %2813 = vst.msk [vmem:[%s4242_s11] sm:$0x3] %vm648_vm10, %v2812_v9  ;;  %v1997_v51 = vpop.xlane.xlu1 %1996 }
0x1f44   :  { %v2519_v48 = vsel %vm648_vm10, %v2518_v12, 0.0 }
0x1f45   :  { %2520 = vadd.xlane.f32.xlu1 %v2519_v48  ;;  %v949_v5 = vpop.xlane.xlu0 %948 }
0x1f46   :  { %v2814_v13 = vsel %vm2800_vm12, %v692_v32, %v949_v5 }
0x1f49   :  { %v1211_v30 = vpop.xlane.xlu0 %1210 }
0x1f4a   :  { %v2815_v18 = vsel %vm2802_vm14, %v2814_v13, %v1211_v30 }
0x1f4d   :  { %v1473_v24 = vpop.xlane.xlu0 %1472 }
0x1f4e   :  { %v2816_v46 = vsel %vm4248_vm5, %v2815_v18, %v1473_v24 }
0x1f51   :  { %v1735_v33 = vpop.xlane.xlu0 %1734 }
0x1f52   :  { %v2817_v39 = vsel %vm4249_vm15, %v2816_v46, %v1735_v33 }
0x1f53   :  { %v2818_v15 = vsel %vm4250_vm11, %v2817_v39, %v1997_v51 }
0x1f55   :  { %v2259_v60 = vpop.xlane.xlu0 %2258 }
0x1f56   :  { %v2819_v43 = vsel %vm4251_vm3, %v2818_v15, %v2259_v60 }
0x1fd2   :  { %v2521_v57 = vpop.xlane.xlu1 %2520 }
0x1fd3   :  { %v2820_v20 = vsel %vm2811_vm8, %v2819_v43, %v2521_v57 }
0x1fd4   :  { %2821 = vst.msk [vmem:[%s4243_s12] sm:$0x3] %vm648_vm10, %v2820_v20 }

</bundles_post_ra>
